<compile_context>
chip_gen: v7x
topology: tpu7x:2x2x1
jax: 0.10.0
libtpu: 0.0.40
codegen_flags: <defaults>
</compile_context>

<pallas_src>
import functools

import jax
import jax.numpy as jnp
from jax.experimental import pallas as pl
from jax.experimental.pallas import tpu as pltpu  # noqa: F401  (kept for future tiled variant)


_NEG_BIG = -1e30          # finite "minus infinity" additive mask (no -inf - -inf NaN)
_LEAKY_SLOPE = 0.2        # GATConv default negative_slope


# ----------------------------------------------------------------------------
# Parameter-slab layout: every block starts at an 8-aligned row, 64-lane wide.
# ----------------------------------------------------------------------------
def _slab_layout(input_dim, hidden_dim):
    assert hidden_dim % 8 == 0
    in_pad = ((max(input_dim, 1) + 7) // 8) * 8
    off, r = {}, 0

    def blk(name, rows):
        nonlocal r
        off[name] = (r, r + rows)
        r += rows

    blk("w1", in_pad)          # [in_pad, hidden]     conv1 lin weight (rows >= input_dim zero)
    blk("w2", hidden_dim)      # [hidden, hidden]     conv2 lin weight
    blk("w3", hidden_dim)      # [hidden, hidden]     conv3 lin weight (lanes >= hidden/2 zero)
    blk("a1", hidden_dim)      # [hidden, hidden]     [A_src | A_dst] block-diag, lanes 0:2H
    blk("a2", hidden_dim)
    blk("a3", hidden_dim)
    blk("aff", 8)              # rows: sc1, sh1, sc2, sh2, sc3, sh3, cls_b1, cls_b2
    blk("wm", hidden_dim)      # classifier W1 (mean half), zero-padded to [hidden, hidden]
    blk("wx", hidden_dim)      # classifier W1 (max half)
    blk("wc2", hidden_dim)     # classifier W2, zero-padded
    off["total"], off["in_pad"] = r, in_pad
    return off


# ----------------------------------------------------------------------------
# Fused forward kernel (single pallas_call, everything VMEM-resident)
# ----------------------------------------------------------------------------
def _fused_forward_kernel(x_ref, adj_ref, onehot_ref, p_ref, out_ref, *,
                          layout, heads, ch, hidden, out_dim, n_graphs):
    L = layout
    aff0 = L["aff"][0]

    # Additive softmax mask (row = dst, col = src), hoisted once for all layers.
    neg_mask = jnp.where(adj_ref[...] > 0.0, 0.0, _NEG_BIG)                  # [N, N]

    # Per-head lane masks over the hidden columns (shared by conv1 / conv2).
    col_ids = jax.lax.broadcasted_iota(jnp.int32, (1, hidden), 1)
    head_masks = [(col_ids >= h * ch) & (col_ids < (h + 1) * ch) for h in range(heads)]

    def gat_bn_relu(x, w_name, a_name, aff_row, n_heads):
        w = p_ref[L[w_name][0]:L[w_name][1], :]                              # [K, hidden]
        a = p_ref[L[a_name][0]:L[a_name][1], :]                              # [hidden, hidden]
        xw = jnp.dot(x, w, preferred_element_type=jnp.float32)               # [N, hidden]

        # src/dst attention scores for all heads in one block matmul, one transpose.
        ab = jnp.dot(xw, a, preferred_element_type=jnp.float32)              # [N, hidden] (lanes 0:2H used)
        abT = jnp.transpose(ab)                                              # [hidden, N]
        a_sT = abT[0:n_heads, :]                                             # [H, N]
        a_dT = abT[n_heads:2 * n_heads, :]                                   # [H, N]

        # Head-stacked attention logits + one fused masked softmax over src.
        e = a_dT[:, :, None] + a_sT[:, None, :]                              # [H, N, N]
        e = jnp.where(e > 0.0, e, _LEAKY_SLOPE * e)                          # LeakyReLU(0.2)
        e = e + neg_mask[None, :, :]
        e = e - jnp.max(e, axis=-1, keepdims=True)
        p = jnp.exp(e)
        p = p * pl.reciprocal(jnp.sum(p, axis=-1, keepdims=True), approx=True)

        # Register-resident multi-head aggregation (no scratch, no partial stores).
        if n_heads == 1:
            agg = jnp.dot(p[0], xw, preferred_element_type=jnp.float32)
        else:
            agg = jnp.dot(p[0], jnp.where(head_masks[0], xw, 0.0),
                          preferred_element_type=jnp.float32)
            for h in range(1, n_heads):
                agg = agg + jnp.dot(p[h], jnp.where(head_masks[h], xw, 0.0),
                                    preferred_element_type=jnp.float32)

        # GAT bias + eval-mode BatchNorm + ReLU folded into one affine epilogue.
        scale = p_ref[aff_row:aff_row + 1, :]
        shift = p_ref[aff_row + 1:aff_row + 2, :]
        return jnp.maximum(agg * scale + shift, 0.0)

    x = gat_bn_relu(x_ref[...], "w1", "a1", aff0 + 0, heads)
    x = gat_bn_relu(x, "w2", "a2", aff0 + 2, heads)
    x = gat_bn_relu(x, "w3", "a3", aff0 + 4, 1)                              # [N, hidden], lanes >= hidden/2 are 0

    # ---- global mean / max pool ----
    oh = onehot_ref[...]                                                     # [G, N]
    counts = jnp.sum(oh, axis=1, keepdims=True)                              # [G, 1]
    x_mean = jnp.dot(oh, x, preferred_element_type=jnp.float32) / counts     # [G, hidden]
    ohT = jnp.transpose(oh)                                                  # [N, G] (one hoisted transpose)
    # x >= 0 after ReLU, so max over (onehot * x) equals the per-graph max.
    maxs = []
    for g in range(n_graphs):                                                # static unroll; G is tiny
        maxs.append(jnp.max(x * ohT[:, g:g + 1], axis=0, keepdims=True))     # [1, hidden]
    x_max = jnp.concatenate(maxs, axis=0)                                    # [G, hidden]

    # ---- classifier: cat([mean, max]) @ W1 done as two matmuls (no lane concat) ----
    wm = p_ref[L["wm"][0]:L["wm"][1], :]
    wx = p_ref[L["wx"][0]:L["wx"][1], :]
    wc2 = p_ref[L["wc2"][0]:L["wc2"][1], :]
    b1 = p_ref[aff0 + 6:aff0 + 7, :]
    b2 = p_ref[aff0 + 7:aff0 + 8, :]
    h = (jnp.dot(x_mean, wm, preferred_element_type=jnp.float32)
         + jnp.dot(x_max, wx, preferred_element_type=jnp.float32) + b1)
    h = jnp.maximum(h, 0.0)                                                  # dropout: identity (eval)
    logits = jnp.dot(h, wc2, preferred_element_type=jnp.float32) + b2        # [G, hidden] (lanes >= out_dim zero)
    out_ref[...] = logits[:, 0:out_dim]


# ----------------------------------------------------------------------------
# Wrapper: one pallas_call for the full forward pass (4 inputs total)
# ----------------------------------------------------------------------------
def forward(param_slab, x, adj, onehot, *, input_dim, hidden_dim, output_dim, heads):
    layout = _slab_layout(input_dim, hidden_dim)
    n = x.shape[0]
    g = onehot.shape[0]
    # Pad node features to the W1 row-block width (zero columns are inert).
    x_pad = jnp.zeros((n, layout["in_pad"]), jnp.float32).at[:, :input_dim].set(x)

    kern = functools.partial(_fused_forward_kernel, layout=layout, heads=heads,
                             ch=hidden_dim // heads, hidden=hidden_dim,
                             out_dim=output_dim, n_graphs=g)
    return pl.pallas_call(
        kern,
        out_shape=jax.ShapeDtypeStruct((g, output_dim), jnp.float32),
    )(x_pad, adj, onehot, param_slab)


# ----------------------------------------------------------------------------
# Parameter construction (deterministic, synthetic) + folding into the slab
# ----------------------------------------------------------------------------
def _gat_params(key, f_in, heads, ch):
    k1, k2, k3 = jax.random.split(key, 3)
    return {
        "heads": heads, "ch": ch,
        # PyTorch lin.weight is [H*C, F_in]; stored transposed so kernel does x @ W.
        "w": 0.2 * jax.random.normal(k1, (f_in, heads * ch), jnp.float32),
        "att_src": 0.2 * jax.random.normal(k2, (heads, ch), jnp.float32),
        "att_dst": 0.2 * jax.random.normal(k3, (heads, ch), jnp.float32),
        "bias": jnp.zeros((heads * ch,), jnp.float32),
    }


def _bn_params(f):
    return {
        "gamma": jnp.ones((f,), jnp.float32),
        "beta": jnp.zeros((f,), jnp.float32),
        "mean": jnp.zeros((f,), jnp.float32),
        "var": jnp.ones((f,), jnp.float32),
    }


def init_params(key, input_dim=3, hidden_dim=64, output_dim=2, heads=4):
    k1, k2, k3, k4, k5 = jax.random.split(key, 5)
    half = hidden_dim // 2
    return {
        "conv1": _gat_params(k1, input_dim, heads, hidden_dim // heads),
        "bn1": _bn_params(hidden_dim),
        "conv2": _gat_params(k2, hidden_dim, heads, hidden_dim // heads),
        "bn2": _bn_params(hidden_dim),
        "conv3": _gat_params(k3, hidden_dim, 1, half),
        "bn3": _bn_params(half),
        # PyTorch Linear weights are [out, in]; stored transposed.
        "cls_w1": 0.2 * jax.random.normal(k4, (hidden_dim, half), jnp.float32),
        "cls_b1": jnp.zeros((half,), jnp.float32),
        "cls_w2": 0.2 * jax.random.normal(k5, (half, output_dim), jnp.float32),
        "cls_b2": jnp.zeros((output_dim,), jnp.float32),
    }


def _att_block(att_src, att_dst, hidden):
    """[hidden, hidden] block-diagonal projection: lanes 0:H -> src score, H:2H -> dst."""
    heads, ch = att_src.shape
    a = jnp.zeros((hidden, hidden), jnp.float32)
    for h in range(heads):
        a = a.at[h * ch:(h + 1) * ch, h].set(att_src[h])
        a = a.at[h * ch:(h + 1) * ch, heads + h].set(att_dst[h])
    return a


def fold_params(params, *, input_dim, hidden_dim, output_dim, eps=1e-5):
    """Fold GAT bias + eval-mode BN into (scale, shift) and pack everything into
    one [total_rows, hidden] f32 slab (exact)."""
    layout = _slab_layout(input_dim, hidden_dim)
    half = hidden_dim // 2
    slab = jnp.zeros((layout["total"], hidden_dim), jnp.float32)

    def put(s, name, a):
        r0 = layout[name][0]
        return s.at[r0:r0 + a.shape[0], 0:a.shape[1]].set(a)

    slab = put(slab, "w1", params["conv1"]["w"])
    slab = put(slab, "w2", params["conv2"]["w"])
    slab = put(slab, "w3", params["conv3"]["w"])
    slab = put(slab, "a1", _att_block(params["conv1"]["att_src"], params["conv1"]["att_dst"], hidden_dim))
    slab = put(slab, "a2", _att_block(params["conv2"]["att_src"], params["conv2"]["att_dst"], hidden_dim))
    slab = put(slab, "a3", _att_block(params["conv3"]["att_src"], params["conv3"]["att_dst"], hidden_dim))

    aff = jnp.zeros((8, hidden_dim), jnp.float32)
    for i, (conv, bn) in enumerate((("conv1", "bn1"), ("conv2", "bn2"), ("conv3", "bn3"))):
        gp, bp = params[conv], params[bn]
        scale = bp["gamma"] * jax.lax.rsqrt(bp["var"] + eps)
        shift = (gp["bias"] - bp["mean"]) * scale + bp["beta"]
        f = scale.shape[0]
        aff = aff.at[2 * i, 0:f].set(scale)
        aff = aff.at[2 * i + 1, 0:f].set(shift)
    aff = aff.at[6, 0:half].set(params["cls_b1"])
    aff = aff.at[7, 0:output_dim].set(params["cls_b2"])
    slab = put(slab, "aff", aff)

    slab = put(slab, "wm", params["cls_w1"][:half, :])      # mean half of cat([mean, max])
    slab = put(slab, "wx", params["cls_w1"][half:, :])      # max half
    slab = put(slab, "wc2", params["cls_w2"])
    return slab


# ----------------------------------------------------------------------------
if __name__ == "__main__":
    key = jax.random.PRNGKey(0)
    k_x, k_p = jax.random.split(key)

    N, G = 12, 2                              # 12 nodes, 2 graphs of 6 nodes each
    input_dim, hidden_dim, output_dim, heads = 3, 64, 2, 4
    nodes_per_graph = N // G

    # Node features [N, input_dim]
    x = jax.random.normal(k_x, (N, input_dim), jnp.float32)

    # Bidirectional ring edges within each graph -> edge_index [2, E]
    src, dst = [], []
    for g in range(G):
        base = g * nodes_per_graph
        for i in range(nodes_per_graph):
            a = base + i
            b = base + (i + 1) % nodes_per_graph
            src += [a, b]
            dst += [b, a]
    edge_index = jnp.array([src, dst], dtype=jnp.int32)
    batch = jnp.array(sum([[g] * nodes_per_graph for g in range(G)], []), dtype=jnp.int32)

    # Dense adjacency mask (row = dst, col = src) + self loops (GATConv default).
    adj = jnp.zeros((N, N), jnp.float32)
    adj = adj.at[edge_index[1], edge_index[0]].set(1.0)
    adj = adj.at[jnp.arange(N), jnp.arange(N)].set(1.0)

    # One-hot graph membership [G, N] for pooling.
    onehot = (batch[None, :] == jnp.arange(G)[:, None]).astype(jnp.float32)

    params = init_params(k_p, input_dim, hidden_dim, output_dim, heads)
    slab = fold_params(params, input_dim=input_dim, hidden_dim=hidden_dim,
                       output_dim=output_dim)

    out = forward(slab, x, adj, onehot, input_dim=input_dim, hidden_dim=hidden_dim,
                  output_dim=output_dim, heads=heads)
    out = jax.block_until_ready(out)
    assert out.shape == (G, output_dim), out.shape
    assert bool(jnp.all(jnp.isfinite(out)))
    print("KERNEL_OK")
</pallas_src>

<mosaic_0001>
module attributes {stable_mosaic.version = 11 : i64} {
  func.func @_fused_forward_kernel(%arg0: memref<12x8xf32, #tpu.memory_space<vmem>>, %arg1: memref<12x12xf32, #tpu.memory_space<vmem>>, %arg2: memref<2x12xf32, #tpu.memory_space<vmem>>, %arg3: memref<528x64xf32, #tpu.memory_space<vmem>>, %arg4: memref<2x2xf32, #tpu.memory_space<vmem>>) attributes {dimension_semantics = [], scalar_prefetch = 0 : i64, scratch_operands = 0 : i64, tpu.core_type = #tpu.core_type<tc>} {
    %c0 = arith.constant 0 : index
    %c0_0 = arith.constant 0 : index
    %0 = vector.load %arg1[%c0, %c0_0] : memref<12x12xf32, #tpu.memory_space<vmem>>, vector<12x12xf32>
    %cst = arith.constant 0.000000e+00 : f32
    %1 = vector.broadcast %cst : f32 to vector<12x12xf32>
    %2 = arith.cmpf ogt, %0, %1 : vector<12x12xf32>
    %cst_1 = arith.constant 0.000000e+00 : f32
    %cst_2 = arith.constant -1.000000e+30 : f32
    %3 = vector.broadcast %cst_1 : f32 to vector<12x12xf32>
    %4 = vector.broadcast %cst_2 : f32 to vector<12x12xf32>
    %5 = arith.select %2, %3, %4 : vector<12x12xi1>, vector<12x12xf32>
    %6 = tpu.iota {dimensions = array<i32: 1>} : vector<1x64xi32>
    %c0_i32 = arith.constant 0 : i32
    %7 = vector.broadcast %c0_i32 : i32 to vector<1x64xi32>
    %8 = arith.cmpi sge, %6, %7 : vector<1x64xi32>
    %c16_i32 = arith.constant 16 : i32
    %9 = vector.broadcast %c16_i32 : i32 to vector<1x64xi32>
    %10 = arith.cmpi slt, %6, %9 : vector<1x64xi32>
    %11 = arith.andi %8, %10 : vector<1x64xi1>
    %c16_i32_3 = arith.constant 16 : i32
    %12 = vector.broadcast %c16_i32_3 : i32 to vector<1x64xi32>
    %13 = arith.cmpi sge, %6, %12 : vector<1x64xi32>
    %c32_i32 = arith.constant 32 : i32
    %14 = vector.broadcast %c32_i32 : i32 to vector<1x64xi32>
    %15 = arith.cmpi slt, %6, %14 : vector<1x64xi32>
    %16 = arith.andi %13, %15 : vector<1x64xi1>
    %c32_i32_4 = arith.constant 32 : i32
    %17 = vector.broadcast %c32_i32_4 : i32 to vector<1x64xi32>
    %18 = arith.cmpi sge, %6, %17 : vector<1x64xi32>
    %c48_i32 = arith.constant 48 : i32
    %19 = vector.broadcast %c48_i32 : i32 to vector<1x64xi32>
    %20 = arith.cmpi slt, %6, %19 : vector<1x64xi32>
    %21 = arith.andi %18, %20 : vector<1x64xi1>
    %c48_i32_5 = arith.constant 48 : i32
    %22 = vector.broadcast %c48_i32_5 : i32 to vector<1x64xi32>
    %23 = arith.cmpi sge, %6, %22 : vector<1x64xi32>
    %c64_i32 = arith.constant 64 : i32
    %24 = vector.broadcast %c64_i32 : i32 to vector<1x64xi32>
    %25 = arith.cmpi slt, %6, %24 : vector<1x64xi32>
    %26 = arith.andi %23, %25 : vector<1x64xi1>
    %c0_6 = arith.constant 0 : index
    %c0_7 = arith.constant 0 : index
    %27 = vector.load %arg0[%c0_6, %c0_7] : memref<12x8xf32, #tpu.memory_space<vmem>>, vector<12x8xf32>
    %c0_8 = arith.constant 0 : index
    %c0_9 = arith.constant 0 : index
    %28 = vector.load %arg3[%c0_8, %c0_9] : memref<528x64xf32, #tpu.memory_space<vmem>>, vector<8x64xf32>
    %c136 = arith.constant 136 : index
    %c0_10 = arith.constant 0 : index
    %29 = vector.load %arg3[%c136, %c0_10] : memref<528x64xf32, #tpu.memory_space<vmem>>, vector<64x64xf32>
    %cst_11 = arith.constant dense<0.000000e+00> : vector<12x64xf32>
    %30 = tpu.matmul %27, %28, %cst_11 {dimension_numbers = #tpu.dot_dimension_numbers<[1], [0], [0], [1], [0, 0, 1, 1], [], []>} : vector<12x8xf32>, vector<8x64xf32>, vector<12x64xf32> -> vector<12x64xf32>
    %cst_12 = arith.constant dense<0.000000e+00> : vector<12x64xf32>
    %31 = tpu.matmul %30, %29, %cst_12 {dimension_numbers = #tpu.dot_dimension_numbers<[1], [0], [0], [1], [0, 0, 1, 1], [], []>} : vector<12x64xf32>, vector<64x64xf32>, vector<12x64xf32> -> vector<12x64xf32>
    %32 = tpu.transpose %31, [1, 0] : vector<12x64xf32> -> vector<64x12xf32>
    %33 = vector.extract_strided_slice %32 {offsets = [0, 0], sizes = [4, 12], strides = [1, 1]} : vector<64x12xf32> to vector<4x12xf32>
    %34 = vector.extract_strided_slice %32 {offsets = [4, 0], sizes = [4, 12], strides = [1, 1]} : vector<64x12xf32> to vector<4x12xf32>
    %35 = vector.shape_cast %34 : vector<4x12xf32> to vector<4x12x1xf32>
    %36 = vector.shape_cast %33 : vector<4x12xf32> to vector<4x1x12xf32>
    %37 = vector.broadcast %35 : vector<4x12x1xf32> to vector<4x12x12xf32>
    %38 = vector.broadcast %36 : vector<4x1x12xf32> to vector<4x12x12xf32>
    %39 = arith.addf %37, %38 : vector<4x12x12xf32>
    %cst_13 = arith.constant 0.000000e+00 : f32
    %40 = vector.broadcast %cst_13 : f32 to vector<4x12x12xf32>
    %41 = arith.cmpf ogt, %39, %40 : vector<4x12x12xf32>
    %cst_14 = arith.constant 2.000000e-01 : f32
    %42 = vector.broadcast %cst_14 : f32 to vector<4x12x12xf32>
    %43 = arith.mulf %42, %39 : vector<4x12x12xf32>
    %44 = arith.select %41, %39, %43 : vector<4x12x12xi1>, vector<4x12x12xf32>
    %45 = vector.shape_cast %5 : vector<12x12xf32> to vector<1x12x12xf32>
    %46 = vector.broadcast %45 : vector<1x12x12xf32> to vector<4x12x12xf32>
    %47 = arith.addf %44, %46 : vector<4x12x12xf32>
    %cst_15 = arith.constant dense<0xFF800000> : vector<4x12xf32>
    %48 = vector.multi_reduction <maximumf>, %47, %cst_15 [2] : vector<4x12x12xf32> to vector<4x12xf32>
    %49 = vector.shape_cast %48 : vector<4x12xf32> to vector<4x12x1xf32>
    %50 = vector.broadcast %49 : vector<4x12x1xf32> to vector<4x12x12xf32>
    %51 = arith.subf %47, %50 : vector<4x12x12xf32>
    %52 = math.exp %51 : vector<4x12x12xf32>
    %cst_16 = arith.constant dense<0.000000e+00> : vector<4x12xf32>
    %53 = vector.multi_reduction <add>, %52, %cst_16 [2] : vector<4x12x12xf32> to vector<4x12xf32>
    %54 = vector.shape_cast %53 : vector<4x12xf32> to vector<4x12x1xf32>
    %55 = tpu.reciprocal %54 {approx = true} : vector<4x12x1xf32> -> vector<4x12x1xf32>
    %56 = vector.broadcast %55 : vector<4x12x1xf32> to vector<4x12x12xf32>
    %57 = arith.mulf %52, %56 : vector<4x12x12xf32>
    %58 = vector.extract_strided_slice %57 {offsets = [0, 0, 0], sizes = [1, 12, 12], strides = [1, 1, 1]} : vector<4x12x12xf32> to vector<1x12x12xf32>
    %59 = vector.shape_cast %58 : vector<1x12x12xf32> to vector<12x12xf32>
    %cst_17 = arith.constant 0.000000e+00 : f32
    %60 = vector.shape_cast %11 : vector<1x64xi1> to vector<1x64xi1>
    %61 = vector.broadcast %60 : vector<1x64xi1> to vector<12x64xi1>
    %62 = vector.broadcast %cst_17 : f32 to vector<12x64xf32>
    %63 = arith.select %61, %30, %62 : vector<12x64xi1>, vector<12x64xf32>
    %cst_18 = arith.constant dense<0.000000e+00> : vector<12x64xf32>
    %64 = tpu.matmul %59, %63, %cst_18 {dimension_numbers = #tpu.dot_dimension_numbers<[1], [0], [0], [1], [0, 0, 1, 1], [], []>} : vector<12x12xf32>, vector<12x64xf32>, vector<12x64xf32> -> vector<12x64xf32>
    %65 = vector.extract_strided_slice %57 {offsets = [1, 0, 0], sizes = [1, 12, 12], strides = [1, 1, 1]} : vector<4x12x12xf32> to vector<1x12x12xf32>
    %66 = vector.shape_cast %65 : vector<1x12x12xf32> to vector<12x12xf32>
    %cst_19 = arith.constant 0.000000e+00 : f32
    %67 = vector.shape_cast %16 : vector<1x64xi1> to vector<1x64xi1>
    %68 = vector.broadcast %67 : vector<1x64xi1> to vector<12x64xi1>
    %69 = vector.broadcast %cst_19 : f32 to vector<12x64xf32>
    %70 = arith.select %68, %30, %69 : vector<12x64xi1>, vector<12x64xf32>
    %cst_20 = arith.constant dense<0.000000e+00> : vector<12x64xf32>
    %71 = tpu.matmul %66, %70, %cst_20 {dimension_numbers = #tpu.dot_dimension_numbers<[1], [0], [0], [1], [0, 0, 1, 1], [], []>} : vector<12x12xf32>, vector<12x64xf32>, vector<12x64xf32> -> vector<12x64xf32>
    %72 = arith.addf %64, %71 : vector<12x64xf32>
    %73 = vector.extract_strided_slice %57 {offsets = [2, 0, 0], sizes = [1, 12, 12], strides = [1, 1, 1]} : vector<4x12x12xf32> to vector<1x12x12xf32>
    %74 = vector.shape_cast %73 : vector<1x12x12xf32> to vector<12x12xf32>
    %cst_21 = arith.constant 0.000000e+00 : f32
    %75 = vector.shape_cast %21 : vector<1x64xi1> to vector<1x64xi1>
    %76 = vector.broadcast %75 : vector<1x64xi1> to vector<12x64xi1>
    %77 = vector.broadcast %cst_21 : f32 to vector<12x64xf32>
    %78 = arith.select %76, %30, %77 : vector<12x64xi1>, vector<12x64xf32>
    %cst_22 = arith.constant dense<0.000000e+00> : vector<12x64xf32>
    %79 = tpu.matmul %74, %78, %cst_22 {dimension_numbers = #tpu.dot_dimension_numbers<[1], [0], [0], [1], [0, 0, 1, 1], [], []>} : vector<12x12xf32>, vector<12x64xf32>, vector<12x64xf32> -> vector<12x64xf32>
    %80 = arith.addf %72, %79 : vector<12x64xf32>
    %81 = vector.extract_strided_slice %57 {offsets = [3, 0, 0], sizes = [1, 12, 12], strides = [1, 1, 1]} : vector<4x12x12xf32> to vector<1x12x12xf32>
    %82 = vector.shape_cast %81 : vector<1x12x12xf32> to vector<12x12xf32>
    %cst_23 = arith.constant 0.000000e+00 : f32
    %83 = vector.shape_cast %26 : vector<1x64xi1> to vector<1x64xi1>
    %84 = vector.broadcast %83 : vector<1x64xi1> to vector<12x64xi1>
    %85 = vector.broadcast %cst_23 : f32 to vector<12x64xf32>
    %86 = arith.select %84, %30, %85 : vector<12x64xi1>, vector<12x64xf32>
    %cst_24 = arith.constant dense<0.000000e+00> : vector<12x64xf32>
    %87 = tpu.matmul %82, %86, %cst_24 {dimension_numbers = #tpu.dot_dimension_numbers<[1], [0], [0], [1], [0, 0, 1, 1], [], []>} : vector<12x12xf32>, vector<12x64xf32>, vector<12x64xf32> -> vector<12x64xf32>
    %88 = arith.addf %80, %87 : vector<12x64xf32>
    %c328 = arith.constant 328 : index
    %c0_25 = arith.constant 0 : index
    %89 = vector.load %arg3[%c328, %c0_25] : memref<528x64xf32, #tpu.memory_space<vmem>>, vector<1x64xf32>
    %c329 = arith.constant 329 : index
    %c0_26 = arith.constant 0 : index
    %90 = vector.load %arg3[%c329, %c0_26] : memref<528x64xf32, #tpu.memory_space<vmem>>, vector<1x64xf32>
    %91 = vector.broadcast %89 : vector<1x64xf32> to vector<12x64xf32>
    %92 = arith.mulf %88, %91 : vector<12x64xf32>
    %93 = vector.broadcast %90 : vector<1x64xf32> to vector<12x64xf32>
    %94 = arith.addf %92, %93 : vector<12x64xf32>
    %cst_27 = arith.constant 0.000000e+00 : f32
    %95 = vector.broadcast %cst_27 : f32 to vector<12x64xf32>
    %96 = arith.maximumf %94, %95 : vector<12x64xf32>
    %c8 = arith.constant 8 : index
    %c0_28 = arith.constant 0 : index
    %97 = vector.load %arg3[%c8, %c0_28] : memref<528x64xf32, #tpu.memory_space<vmem>>, vector<64x64xf32>
    %c200 = arith.constant 200 : index
    %c0_29 = arith.constant 0 : index
    %98 = vector.load %arg3[%c200, %c0_29] : memref<528x64xf32, #tpu.memory_space<vmem>>, vector<64x64xf32>
    %cst_30 = arith.constant dense<0.000000e+00> : vector<12x64xf32>
    %99 = tpu.matmul %96, %97, %cst_30 {dimension_numbers = #tpu.dot_dimension_numbers<[1], [0], [0], [1], [0, 0, 1, 1], [], []>} : vector<12x64xf32>, vector<64x64xf32>, vector<12x64xf32> -> vector<12x64xf32>
    %cst_31 = arith.constant dense<0.000000e+00> : vector<12x64xf32>
    %100 = tpu.matmul %99, %98, %cst_31 {dimension_numbers = #tpu.dot_dimension_numbers<[1], [0], [0], [1], [0, 0, 1, 1], [], []>} : vector<12x64xf32>, vector<64x64xf32>, vector<12x64xf32> -> vector<12x64xf32>
    %101 = tpu.transpose %100, [1, 0] : vector<12x64xf32> -> vector<64x12xf32>
    %102 = vector.extract_strided_slice %101 {offsets = [0, 0], sizes = [4, 12], strides = [1, 1]} : vector<64x12xf32> to vector<4x12xf32>
    %103 = vector.extract_strided_slice %101 {offsets = [4, 0], sizes = [4, 12], strides = [1, 1]} : vector<64x12xf32> to vector<4x12xf32>
    %104 = vector.shape_cast %103 : vector<4x12xf32> to vector<4x12x1xf32>
    %105 = vector.shape_cast %102 : vector<4x12xf32> to vector<4x1x12xf32>
    %106 = vector.broadcast %104 : vector<4x12x1xf32> to vector<4x12x12xf32>
    %107 = vector.broadcast %105 : vector<4x1x12xf32> to vector<4x12x12xf32>
    %108 = arith.addf %106, %107 : vector<4x12x12xf32>
    %cst_32 = arith.constant 0.000000e+00 : f32
    %109 = vector.broadcast %cst_32 : f32 to vector<4x12x12xf32>
    %110 = arith.cmpf ogt, %108, %109 : vector<4x12x12xf32>
    %cst_33 = arith.constant 2.000000e-01 : f32
    %111 = vector.broadcast %cst_33 : f32 to vector<4x12x12xf32>
    %112 = arith.mulf %111, %108 : vector<4x12x12xf32>
    %113 = arith.select %110, %108, %112 : vector<4x12x12xi1>, vector<4x12x12xf32>
    %114 = vector.shape_cast %5 : vector<12x12xf32> to vector<1x12x12xf32>
    %115 = vector.broadcast %114 : vector<1x12x12xf32> to vector<4x12x12xf32>
    %116 = arith.addf %113, %115 : vector<4x12x12xf32>
    %cst_34 = arith.constant dense<0xFF800000> : vector<4x12xf32>
    %117 = vector.multi_reduction <maximumf>, %116, %cst_34 [2] : vector<4x12x12xf32> to vector<4x12xf32>
    %118 = vector.shape_cast %117 : vector<4x12xf32> to vector<4x12x1xf32>
    %119 = vector.broadcast %118 : vector<4x12x1xf32> to vector<4x12x12xf32>
    %120 = arith.subf %116, %119 : vector<4x12x12xf32>
    %121 = math.exp %120 : vector<4x12x12xf32>
    %cst_35 = arith.constant dense<0.000000e+00> : vector<4x12xf32>
    %122 = vector.multi_reduction <add>, %121, %cst_35 [2] : vector<4x12x12xf32> to vector<4x12xf32>
    %123 = vector.shape_cast %122 : vector<4x12xf32> to vector<4x12x1xf32>
    %124 = tpu.reciprocal %123 {approx = true} : vector<4x12x1xf32> -> vector<4x12x1xf32>
    %125 = vector.broadcast %124 : vector<4x12x1xf32> to vector<4x12x12xf32>
    %126 = arith.mulf %121, %125 : vector<4x12x12xf32>
    %127 = vector.extract_strided_slice %126 {offsets = [0, 0, 0], sizes = [1, 12, 12], strides = [1, 1, 1]} : vector<4x12x12xf32> to vector<1x12x12xf32>
    %128 = vector.shape_cast %127 : vector<1x12x12xf32> to vector<12x12xf32>
    %cst_36 = arith.constant 0.000000e+00 : f32
    %129 = vector.shape_cast %11 : vector<1x64xi1> to vector<1x64xi1>
    %130 = vector.broadcast %129 : vector<1x64xi1> to vector<12x64xi1>
    %131 = vector.broadcast %cst_36 : f32 to vector<12x64xf32>
    %132 = arith.select %130, %99, %131 : vector<12x64xi1>, vector<12x64xf32>
    %cst_37 = arith.constant dense<0.000000e+00> : vector<12x64xf32>
    %133 = tpu.matmul %128, %132, %cst_37 {dimension_numbers = #tpu.dot_dimension_numbers<[1], [0], [0], [1], [0, 0, 1, 1], [], []>} : vector<12x12xf32>, vector<12x64xf32>, vector<12x64xf32> -> vector<12x64xf32>
    %134 = vector.extract_strided_slice %126 {offsets = [1, 0, 0], sizes = [1, 12, 12], strides = [1, 1, 1]} : vector<4x12x12xf32> to vector<1x12x12xf32>
    %135 = vector.shape_cast %134 : vector<1x12x12xf32> to vector<12x12xf32>
    %cst_38 = arith.constant 0.000000e+00 : f32
    %136 = vector.shape_cast %16 : vector<1x64xi1> to vector<1x64xi1>
    %137 = vector.broadcast %136 : vector<1x64xi1> to vector<12x64xi1>
    %138 = vector.broadcast %cst_38 : f32 to vector<12x64xf32>
    %139 = arith.select %137, %99, %138 : vector<12x64xi1>, vector<12x64xf32>
    %cst_39 = arith.constant dense<0.000000e+00> : vector<12x64xf32>
    %140 = tpu.matmul %135, %139, %cst_39 {dimension_numbers = #tpu.dot_dimension_numbers<[1], [0], [0], [1], [0, 0, 1, 1], [], []>} : vector<12x12xf32>, vector<12x64xf32>, vector<12x64xf32> -> vector<12x64xf32>
    %141 = arith.addf %133, %140 : vector<12x64xf32>
    %142 = vector.extract_strided_slice %126 {offsets = [2, 0, 0], sizes = [1, 12, 12], strides = [1, 1, 1]} : vector<4x12x12xf32> to vector<1x12x12xf32>
    %143 = vector.shape_cast %142 : vector<1x12x12xf32> to vector<12x12xf32>
    %cst_40 = arith.constant 0.000000e+00 : f32
    %144 = vector.shape_cast %21 : vector<1x64xi1> to vector<1x64xi1>
    %145 = vector.broadcast %144 : vector<1x64xi1> to vector<12x64xi1>
    %146 = vector.broadcast %cst_40 : f32 to vector<12x64xf32>
    %147 = arith.select %145, %99, %146 : vector<12x64xi1>, vector<12x64xf32>
    %cst_41 = arith.constant dense<0.000000e+00> : vector<12x64xf32>
    %148 = tpu.matmul %143, %147, %cst_41 {dimension_numbers = #tpu.dot_dimension_numbers<[1], [0], [0], [1], [0, 0, 1, 1], [], []>} : vector<12x12xf32>, vector<12x64xf32>, vector<12x64xf32> -> vector<12x64xf32>
    %149 = arith.addf %141, %148 : vector<12x64xf32>
    %150 = vector.extract_strided_slice %126 {offsets = [3, 0, 0], sizes = [1, 12, 12], strides = [1, 1, 1]} : vector<4x12x12xf32> to vector<1x12x12xf32>
    %151 = vector.shape_cast %150 : vector<1x12x12xf32> to vector<12x12xf32>
    %cst_42 = arith.constant 0.000000e+00 : f32
    %152 = vector.shape_cast %26 : vector<1x64xi1> to vector<1x64xi1>
    %153 = vector.broadcast %152 : vector<1x64xi1> to vector<12x64xi1>
    %154 = vector.broadcast %cst_42 : f32 to vector<12x64xf32>
    %155 = arith.select %153, %99, %154 : vector<12x64xi1>, vector<12x64xf32>
    %cst_43 = arith.constant dense<0.000000e+00> : vector<12x64xf32>
    %156 = tpu.matmul %151, %155, %cst_43 {dimension_numbers = #tpu.dot_dimension_numbers<[1], [0], [0], [1], [0, 0, 1, 1], [], []>} : vector<12x12xf32>, vector<12x64xf32>, vector<12x64xf32> -> vector<12x64xf32>
    %157 = arith.addf %149, %156 : vector<12x64xf32>
    %c330 = arith.constant 330 : index
    %c0_44 = arith.constant 0 : index
    %158 = vector.load %arg3[%c330, %c0_44] : memref<528x64xf32, #tpu.memory_space<vmem>>, vector<1x64xf32>
    %c331 = arith.constant 331 : index
    %c0_45 = arith.constant 0 : index
    %159 = vector.load %arg3[%c331, %c0_45] : memref<528x64xf32, #tpu.memory_space<vmem>>, vector<1x64xf32>
    %160 = vector.broadcast %158 : vector<1x64xf32> to vector<12x64xf32>
    %161 = arith.mulf %157, %160 : vector<12x64xf32>
    %162 = vector.broadcast %159 : vector<1x64xf32> to vector<12x64xf32>
    %163 = arith.addf %161, %162 : vector<12x64xf32>
    %cst_46 = arith.constant 0.000000e+00 : f32
    %164 = vector.broadcast %cst_46 : f32 to vector<12x64xf32>
    %165 = arith.maximumf %163, %164 : vector<12x64xf32>
    %c72 = arith.constant 72 : index
    %c0_47 = arith.constant 0 : index
    %166 = vector.load %arg3[%c72, %c0_47] : memref<528x64xf32, #tpu.memory_space<vmem>>, vector<64x64xf32>
    %c264 = arith.constant 264 : index
    %c0_48 = arith.constant 0 : index
    %167 = vector.load %arg3[%c264, %c0_48] : memref<528x64xf32, #tpu.memory_space<vmem>>, vector<64x64xf32>
    %cst_49 = arith.constant dense<0.000000e+00> : vector<12x64xf32>
    %168 = tpu.matmul %165, %166, %cst_49 {dimension_numbers = #tpu.dot_dimension_numbers<[1], [0], [0], [1], [0, 0, 1, 1], [], []>} : vector<12x64xf32>, vector<64x64xf32>, vector<12x64xf32> -> vector<12x64xf32>
    %cst_50 = arith.constant dense<0.000000e+00> : vector<12x64xf32>
    %169 = tpu.matmul %168, %167, %cst_50 {dimension_numbers = #tpu.dot_dimension_numbers<[1], [0], [0], [1], [0, 0, 1, 1], [], []>} : vector<12x64xf32>, vector<64x64xf32>, vector<12x64xf32> -> vector<12x64xf32>
    %170 = tpu.transpose %169, [1, 0] : vector<12x64xf32> -> vector<64x12xf32>
    %171 = vector.extract_strided_slice %170 {offsets = [0, 0], sizes = [1, 12], strides = [1, 1]} : vector<64x12xf32> to vector<1x12xf32>
    %172 = vector.extract_strided_slice %170 {offsets = [1, 0], sizes = [1, 12], strides = [1, 1]} : vector<64x12xf32> to vector<1x12xf32>
    %173 = vector.shape_cast %172 : vector<1x12xf32> to vector<1x12x1xf32>
    %174 = vector.shape_cast %171 : vector<1x12xf32> to vector<1x1x12xf32>
    %175 = vector.broadcast %173 : vector<1x12x1xf32> to vector<1x12x12xf32>
    %176 = vector.broadcast %174 : vector<1x1x12xf32> to vector<1x12x12xf32>
    %177 = arith.addf %175, %176 : vector<1x12x12xf32>
    %cst_51 = arith.constant 0.000000e+00 : f32
    %178 = vector.broadcast %cst_51 : f32 to vector<1x12x12xf32>
    %179 = arith.cmpf ogt, %177, %178 : vector<1x12x12xf32>
    %cst_52 = arith.constant 2.000000e-01 : f32
    %180 = vector.broadcast %cst_52 : f32 to vector<1x12x12xf32>
    %181 = arith.mulf %180, %177 : vector<1x12x12xf32>
    %182 = arith.select %179, %177, %181 : vector<1x12x12xi1>, vector<1x12x12xf32>
    %183 = vector.shape_cast %5 : vector<12x12xf32> to vector<1x12x12xf32>
    %184 = arith.addf %182, %183 : vector<1x12x12xf32>
    %cst_53 = arith.constant dense<0xFF800000> : vector<1x12xf32>
    %185 = vector.multi_reduction <maximumf>, %184, %cst_53 [2] : vector<1x12x12xf32> to vector<1x12xf32>
    %186 = vector.shape_cast %185 : vector<1x12xf32> to vector<1x12x1xf32>
    %187 = vector.broadcast %186 : vector<1x12x1xf32> to vector<1x12x12xf32>
    %188 = arith.subf %184, %187 : vector<1x12x12xf32>
    %189 = math.exp %188 : vector<1x12x12xf32>
    %cst_54 = arith.constant dense<0.000000e+00> : vector<1x12xf32>
    %190 = vector.multi_reduction <add>, %189, %cst_54 [2] : vector<1x12x12xf32> to vector<1x12xf32>
    %191 = vector.shape_cast %190 : vector<1x12xf32> to vector<1x12x1xf32>
    %192 = tpu.reciprocal %191 {approx = true} : vector<1x12x1xf32> -> vector<1x12x1xf32>
    %193 = vector.broadcast %192 : vector<1x12x1xf32> to vector<1x12x12xf32>
    %194 = arith.mulf %189, %193 : vector<1x12x12xf32>
    %195 = vector.shape_cast %194 : vector<1x12x12xf32> to vector<12x12xf32>
    %cst_55 = arith.constant dense<0.000000e+00> : vector<12x64xf32>
    %196 = tpu.matmul %195, %168, %cst_55 {dimension_numbers = #tpu.dot_dimension_numbers<[1], [0], [0], [1], [0, 0, 1, 1], [], []>} : vector<12x12xf32>, vector<12x64xf32>, vector<12x64xf32> -> vector<12x64xf32>
    %c332 = arith.constant 332 : index
    %c0_56 = arith.constant 0 : index
    %197 = vector.load %arg3[%c332, %c0_56] : memref<528x64xf32, #tpu.memory_space<vmem>>, vector<1x64xf32>
    %c333 = arith.constant 333 : index
    %c0_57 = arith.constant 0 : index
    %198 = vector.load %arg3[%c333, %c0_57] : memref<528x64xf32, #tpu.memory_space<vmem>>, vector<1x64xf32>
    %199 = vector.broadcast %197 : vector<1x64xf32> to vector<12x64xf32>
    %200 = arith.mulf %196, %199 : vector<12x64xf32>
    %201 = vector.broadcast %198 : vector<1x64xf32> to vector<12x64xf32>
    %202 = arith.addf %200, %201 : vector<12x64xf32>
    %cst_58 = arith.constant 0.000000e+00 : f32
    %203 = vector.broadcast %cst_58 : f32 to vector<12x64xf32>
    %204 = arith.maximumf %202, %203 : vector<12x64xf32>
    %c0_59 = arith.constant 0 : index
    %c0_60 = arith.constant 0 : index
    %205 = vector.load %arg2[%c0_59, %c0_60] : memref<2x12xf32, #tpu.memory_space<vmem>>, vector<2x12xf32>
    %cst_61 = arith.constant dense<0.000000e+00> : vector<2xf32>
    %206 = vector.multi_reduction <add>, %205, %cst_61 [1] : vector<2x12xf32> to vector<2xf32>
    %207 = vector.shape_cast %206 : vector<2xf32> to vector<2x1xf32>
    %cst_62 = arith.constant dense<0.000000e+00> : vector<2x64xf32>
    %208 = tpu.matmul %205, %204, %cst_62 {dimension_numbers = #tpu.dot_dimension_numbers<[1], [0], [0], [1], [0, 0, 1, 1], [], []>} : vector<2x12xf32>, vector<12x64xf32>, vector<2x64xf32> -> vector<2x64xf32>
    %209 = vector.broadcast %207 : vector<2x1xf32> to vector<2x64xf32>
    %210 = arith.divf %208, %209 : vector<2x64xf32>
    %211 = tpu.transpose %205, [1, 0] : vector<2x12xf32> -> vector<12x2xf32>
    %212 = vector.extract_strided_slice %211 {offsets = [0, 0], sizes = [12, 1], strides = [1, 1]} : vector<12x2xf32> to vector<12x1xf32>
    %213 = vector.broadcast %212 : vector<12x1xf32> to vector<12x64xf32>
    %214 = arith.mulf %204, %213 : vector<12x64xf32>
    %cst_63 = arith.constant dense<0xFF800000> : vector<64xf32>
    %215 = vector.multi_reduction <maximumf>, %214, %cst_63 [0] : vector<12x64xf32> to vector<64xf32>
    %216 = vector.shape_cast %215 : vector<64xf32> to vector<1x64xf32>
    %217 = vector.extract_strided_slice %211 {offsets = [0, 1], sizes = [12, 1], strides = [1, 1]} : vector<12x2xf32> to vector<12x1xf32>
    %218 = vector.broadcast %217 : vector<12x1xf32> to vector<12x64xf32>
    %219 = arith.mulf %204, %218 : vector<12x64xf32>
    %cst_64 = arith.constant dense<0xFF800000> : vector<64xf32>
    %220 = vector.multi_reduction <maximumf>, %219, %cst_64 [0] : vector<12x64xf32> to vector<64xf32>
    %221 = vector.shape_cast %220 : vector<64xf32> to vector<1x64xf32>
    %222 = tpu.concatenate %216, %221 in 0 : vector<1x64xf32>, vector<1x64xf32> -> vector<2x64xf32>
    %c336 = arith.constant 336 : index
    %c0_65 = arith.constant 0 : index
    %223 = vector.load %arg3[%c336, %c0_65] : memref<528x64xf32, #tpu.memory_space<vmem>>, vector<64x64xf32>
    %c400 = arith.constant 400 : index
    %c0_66 = arith.constant 0 : index
    %224 = vector.load %arg3[%c400, %c0_66] : memref<528x64xf32, #tpu.memory_space<vmem>>, vector<64x64xf32>
    %c464 = arith.constant 464 : index
    %c0_67 = arith.constant 0 : index
    %225 = vector.load %arg3[%c464, %c0_67] : memref<528x64xf32, #tpu.memory_space<vmem>>, vector<64x64xf32>
    %c334 = arith.constant 334 : index
    %c0_68 = arith.constant 0 : index
    %226 = vector.load %arg3[%c334, %c0_68] : memref<528x64xf32, #tpu.memory_space<vmem>>, vector<1x64xf32>
    %c335 = arith.constant 335 : index
    %c0_69 = arith.constant 0 : index
    %227 = vector.load %arg3[%c335, %c0_69] : memref<528x64xf32, #tpu.memory_space<vmem>>, vector<1x64xf32>
    %cst_70 = arith.constant dense<0.000000e+00> : vector<2x64xf32>
    %228 = tpu.matmul %210, %223, %cst_70 {dimension_numbers = #tpu.dot_dimension_numbers<[1], [0], [0], [1], [0, 0, 1, 1], [], []>} : vector<2x64xf32>, vector<64x64xf32>, vector<2x64xf32> -> vector<2x64xf32>
    %cst_71 = arith.constant dense<0.000000e+00> : vector<2x64xf32>
    %229 = tpu.matmul %222, %224, %cst_71 {dimension_numbers = #tpu.dot_dimension_numbers<[1], [0], [0], [1], [0, 0, 1, 1], [], []>} : vector<2x64xf32>, vector<64x64xf32>, vector<2x64xf32> -> vector<2x64xf32>
    %230 = arith.addf %228, %229 : vector<2x64xf32>
    %231 = vector.broadcast %226 : vector<1x64xf32> to vector<2x64xf32>
    %232 = arith.addf %230, %231 : vector<2x64xf32>
    %cst_72 = arith.constant 0.000000e+00 : f32
    %233 = vector.broadcast %cst_72 : f32 to vector<2x64xf32>
    %234 = arith.maximumf %232, %233 : vector<2x64xf32>
    %cst_73 = arith.constant dense<0.000000e+00> : vector<2x64xf32>
    %235 = tpu.matmul %234, %225, %cst_73 {dimension_numbers = #tpu.dot_dimension_numbers<[1], [0], [0], [1], [0, 0, 1, 1], [], []>} : vector<2x64xf32>, vector<64x64xf32>, vector<2x64xf32> -> vector<2x64xf32>
    %236 = vector.broadcast %227 : vector<1x64xf32> to vector<2x64xf32>
    %237 = arith.addf %235, %236 : vector<2x64xf32>
    %238 = vector.extract_strided_slice %237 {offsets = [0, 0], sizes = [2, 2], strides = [1, 1]} : vector<2x64xf32> to vector<2x2xf32>
    %c0_74 = arith.constant 0 : index
    %c0_75 = arith.constant 0 : index
    %239 = vector.load %arg4[%c0_74, %c0_75] : memref<2x2xf32, #tpu.memory_space<vmem>>, vector<2x2xf32>
    tpu.vector_store %arg4[%c0_74, %c0_75], %238 {strides = array<i32>} : memref<2x2xf32, #tpu.memory_space<vmem>>, vector<2x2xf32>,
    return
  }
}

</mosaic_0001>

<bundles_post_ra>
// kernel: tpu_custom_call.1
= control target key start
LH: loop header
LB: loop body
LE: loop exit
PB: predicated region body
PF: predicated region fallthrough
CT: control target
= control target key end

     0   :  { %vm49_vm0 = vcmask 64512   ;;  %s3692_s0 = inlined_call_operand.vmem [shape: f32[12,8], index: 0, kind: input, shape index: {}]   ;;  %s3693_s1 = inlined_call_operand.vmem [shape: f32[12,12], index: 1, kind: input, shape index: {}]   ;;  %s3694_s2 = inlined_call_operand.vmem [shape: f32[2,12], index: 2, kind: input, shape index: {}]   ;;  %s3695_s3 = inlined_call_operand.vmem [shape: f32[528,64], index: 3, kind: input, shape index: {}]   ;;  %s3696_s4 = inlined_call_operand.hbm [shape: f32[2,2], index: 4, kind: output, shape index: {}]  }
   0x1   :  { %v40_v0 = vld [vmem:[%s3695_s3] sm:$0xff]  ;;  %v39_v2 = vld [vmem:[%s3692_s0 + $0x8] sm:$0xf]  ;;  %v42_v4 = vld [vmem:[%s3695_s3 + $0x90] sm:$0xff] }
   0x2   :  { %v38_v1 = vld [vmem:[%s3692_s0] sm:$0xff]  ;;  %2592 = vmatprep.subr.mxu0 %v40_v0  ;;  %v41_v3 = vld [vmem:[%s3695_s3 + $0x88] sm:$0xff]  ;;  %v43_v5 = vld [vmem:[%s3695_s3 + $0x98] sm:$0xff] }
   0x3   :  { %2594 = vmatprep.mubr.msk.f32.mxu0 %vm49_vm0, %v38_v1  ;;  %2593 = vmatpush3.msra.mxu0 %v40_v0  ;;  %v2819_v6 = vpack.c.bf16 %v42_v4, %v41_v3  ;;  %v44_v7 = vld [vmem:[%s3695_s3 + $0xa0] sm:$0xff]  ;;  %v45_v9 = vld [vmem:[%s3695_s3 + $0xa8] sm:$0xff]  ;;  %v46_v10 = vld [vmem:[%s3695_s3 + $0xb0] sm:$0xff] }
   0x4   :  { %2595 = vmatmul.mubr.msk.f32.vlgmr.msra.gmra.mrb[0].mxu0 %vm49_vm0, %v39_v2  ;;  %v2823_v8 = vpack.c.bf16 %v44_v7, %v43_v5 }
   0x5   :  { %9 = vsyncpa [#allocation3], 0  ;;  %2820 = vmatprep.subr.bf16.mxu1 %v2819_v6  ;;  %v2827_v11 = vpack.c.bf16 %v46_v10, %v45_v9  ;;  %v47_v12 = vld [vmem:[%s3695_s3 + $0xb8] sm:$0xff]  ;;  %v48_v13 = vld [vmem:[%s3695_s3 + $0xc0] sm:$0xff]  ;;  %v24_v15 = vlaneseq  ;;  %vm478_vm8 = vcmask 1043456   ;;  %vm131_vm12 = vcmask 523264  }
   0x6   :  { %2822 = vmatpush3.bf16.msra.mxu1 %v2819_v6  ;;  %v2831_v14 = vpack.c.bf16 %v48_v13, %v47_v12  ;;  %v3115_v45 = vmov 1966171168   ;;  %v18_v53 = vld [vmem:[%s3693_s1] sm:$0xff]  ;;  %v19_v60 = vld [vmem:[%s3693_s1 + $0x8] sm:$0xf]  ;;  %s3123_s0 = smov [#allocation2]  }
   0x7   :  { %2824 = vmatprep.subr.bf16.mxu1 %v2823_v8  ;;  %v3182_v16 = vand.u32 127, %v24_v15  ;;  %v3249_v35 = vshrl.u32 %v24_v15, 7  ;;  %v291_v46 = vunpack.c.l.s4 %v3115_v45  ;;  %vm20_vm0 = vcmp.gt.f32.partialorder %v18_v53, 0.0  ;;  %s2405_s29 = sshll.u32 %s3123_s0, 4  ;;  %s2406_s29 = int_to_ptr.vmem [resolvable:$true] %s2405_s29 }
   0x8   :  { %v3116_v61 = vmov -1e+30   ;;  %p3096_p1 = scmp.lt.s32.totalorder %s2406_s29, %s2406_s29 }
   0x9   :  { %vm29_vm1 = vcmp.ge.s32.totalorder %v3182_v16, 16  ;;  %vm30_vm2 = vcmp.lt.s32.totalorder %v3182_v16, 32  ;;  %vm32_vm3 = vcmp.ge.s32.totalorder %v3182_v16, 32  ;;  %vm33_vm4 = vcmp.lt.s32.totalorder %v3182_v16, 48 }
   0xa   :  { %2826 = vmatpush3.bf16.msra.mxu1 %v2823_v8  ;;  %vm35_vm5 = vcmp.ge.s32.totalorder %v3182_v16, 48  ;;  %vm36_vm6 = vcmp.lt.s32.totalorder %v3182_v16, 64  ;;  %vm3190_vm7 = vmand %vm29_vm1, %vm30_vm2  ;;  %vm27_vm10 = vcmp.lt.s32.totalorder %v3182_v16, 16  ;;  %v269_v36 = vsub.s32 6, %v3249_v35 }
   0xb   :  { %2828 = vmatprep.subr.bf16.mxu1 %v2827_v11  ;;  %vm3194_vm9 = vmand %vm32_vm3, %vm33_vm4  ;;  %v247_v37 = vsub.s32 4, %v3249_v35  ;;  %v258_v41 = vsub.s32 5, %v3249_v35  ;;  %v280_v43 = vsub.s32 7, %v3249_v35  ;;  %v292_v47 = vunpack.c.0.s8 %v291_v46 }
   0xc   :  { %vm3199_vm11 = vmand %vm35_vm5, %vm36_vm6  ;;  %v3269_v52 = vsub.s32 0, %v3249_v35  ;;  %v3279_v62 = vsel %vm20_vm0, 0.0, %v3116_v61  ;;  %vm21_vm3 = vcmp.gt.f32.partialorder %v19_v60, 0.0  ;;  %vm374_vm4 = vcmask 97280  }
   0xd   :  { %vm3206_vm13 = vmpackc.low %vm478_vm8, %vm3190_vm7  ;;  %v3264_v48 = vsub.s32 %v292_v47, %v3249_v35  ;;  %v3283_v9 = vsel %vm21_vm3, 0.0, %v3116_v61  ;;  %vm378_vm6 = vcmask 93184  }
   0xe   :  { %2830 = vmatpush3.bf16.msra.mxu1 %v2827_v11  ;;  %vm3217_vm14 = vmpackc.low %vm478_vm8, %vm27_vm10 }
   0xf   :  { %2832 = vmatprep.subr.bf16.mxu1 %v2831_v14  ;;  %vm3234_vm15 = vmpackc.low %vm478_vm8, %vm3194_vm9 }
  0x12   :  { %2834 = vmatpush3.bf16.msra.mxu1 %v2831_v14 }
  0xd7   :  { %v2596_v20 = vpop.f32.mrb[0].mxu0 }
  0xd8   :  { %v122_v22 = vpop.f32.mrb[1].mxu0  ;;  %v471_v23 = vsel %vm3190_vm7, %v2596_v20, 0.0  ;;  %v467_v24 = vsel %vm27_vm10, %v2596_v20, 0.0  ;;  %v644_v26 = vsel %vm3194_vm9, %v2596_v20, 0.0  ;;  %v734_v27 = vsel %vm3199_vm11, %v2596_v20, 0.0 }
  0xd9   :  { %2613 = vmatprep.mubr.msk.f32.mxu1 %vm131_vm12, %v122_v22  ;;  %v2835_v28 = vpack.c.bf16 %v471_v23, %v122_v22  ;;  %v2841_v29 = vpack.c.bf16 %v467_v24, %v122_v22  ;;  %v3226_v30 = vpack.c.bf16 %v644_v26, %v122_v22  ;;  %v3228_v31 = vpack.c.bf16 %v734_v27, %v122_v22 }
  0xda   :  { %2614 = vmatmul.mubr.msk.f32.vlgmr.msra.gmra.mrb[0].mxu1 %vm131_vm12, %v2596_v20 }
  0xdb   :  { %2837 = vmatprep.subr.msk.bf16.mxu1 %vm3206_vm13, %v2835_v28  ;;  %2843 = vmatprep.subr.msk.bf16.mxu0 %vm3217_vm14, %v2841_v29 }
  0xdc   :  { %2840 = vmatpush3.bf16.msk.msra.mxu1 %vm3206_vm13, %v2835_v28  ;;  %2846 = vmatpush3.bf16.msk.msra.mxu0 %vm3217_vm14, %v2841_v29 }
  0xdd   :  { %2849 = vmatprep.subr.msk.bf16.mxu0 %vm3234_vm15, %v3226_v30 }
 0x1ad   :  { %v2615_v33 = vpop.f32.mrb[0].mxu1 }
 0x1ae   :  { %v204_v34 = vpop.f32.mrb[1].mxu1 }
 0x1af   :  { %213 = vxpose.xlu0.b32.start [1/2] (short) (narrow) %v204_v34, 8 }
 0x1b3   :  { %214 = vxpose.xlu0.b32.end [2/2] (short) (narrow) %v2615_v33, 8 }
 0x22f   :  { %v229_v38 = vpop.trf.xlu0 }
 0x230   :  { %v270_v39 = vrot.slane %v229_v38, %v269_v36  ;;  %v248_v40 = vrot.slane %v229_v38, %v247_v37  ;;  %v259_v42 = vrot.slane %v229_v38, %v258_v41  ;;  %v281_v44 = vrot.slane %v229_v38, %v280_v43 }
 0x231   :  { %v296_v49 = vrot.slane %v229_v38, %v3264_v48 }
 0x232   :  { %272 = vbcast.lane.b32.xlu0 %v270_v39, 256  ;;  %250 = vbcast.lane.b32.xlu1 %v248_v40, 256 }
 0x233   :  { %v304_v50 = vrot.slane %v296_v49, %v3264_v48  ;;  %v297_v63 = vcombine.high %v296_v49, %v296_v49 }
 0x235   :  { %v312_v51 = vcombine.high %v304_v50, %v304_v50  ;;  %v317_v55 = vrot.slane %v304_v50, %v3269_v52  ;;  %v311_v8 = vrot.slane %v297_v63, %v3264_v48 }
 0x236   :  { %254 = vbcast.lane.b32.xlu1 %v248_v40, 264 }
 0x237   :  { %v325_v54 = vrot.slane %v312_v51, %v3269_v52  ;;  %v321_v22 = vrot.slane %v311_v8, %v3269_v52  ;;  %v313_v23 = vcombine.high %v311_v8, %v311_v8 }
 0x239   :  { %v329_v38 = vrot.slane %v313_v23, %v3269_v52 }
 0x23a   :  { %276 = vbcast.lane.b32.xlu1 %v270_v39, 264 }
 0x23e   :  { %261 = vbcast.lane.b32.xlu1 %v259_v42, 256 }
 0x242   :  { %283 = vbcast.lane.b32.xlu1 %v281_v44, 256 }
 0x246   :  { %265 = vbcast.lane.b32.xlu1 %v259_v42, 264 }
 0x24a   :  { %287 = vbcast.lane.b32.xlu1 %v281_v44, 264 }
 0x2a4   :  { %v273_v56 = vpop.permute.xlu0 %272  ;;  %v251_v57 = vpop.permute.xlu1 %250 }
 0x2a5   :  { %v338_v58 = vadd.f32 %v325_v54, %v273_v56  ;;  %v334_v59 = vadd.f32 %v317_v55, %v251_v57 }
 0x2a7   :  { %vm346_vm1 = vcmp.gt.f32.partialorder %v338_v58, 0.0  ;;  %v354_v0 = vmul.f32 0.2, %v338_v58  ;;  %vm342_vm2 = vcmp.gt.f32.partialorder %v334_v59, 0.0  ;;  %v350_v1 = vmul.f32 0.2, %v334_v59 }
 0x2a8   :  { %v255_v2 = vpop.permute.xlu1 %254 }
 0x2a9   :  { %v335_v3 = vadd.f32 %v317_v55, %v255_v2  ;;  %v358_v4 = vsel %vm342_vm2, %v334_v59, %v350_v1  ;;  %v362_v5 = vsel %vm346_vm1, %v338_v58, %v354_v0 }
 0x2aa   :  { %v366_v6 = vadd.f32 %v358_v4, %v3279_v62  ;;  %v370_v12 = vadd.f32 %v362_v5, %v3279_v62 }
 0x2ab   :  { %vm343_vm5 = vcmp.gt.f32.partialorder %v335_v3, 0.0  ;;  %v351_v7 = vmul.f32 0.2, %v335_v3 }
 0x2ac   :  { %v277_v10 = vpop.permute.xlu1 %276  ;;  %v375_v11 = vsel %vm374_vm4, %v366_v6, -inf  ;;  %v388_v27 = vsel %vm374_vm4, %v370_v12, -inf }
 0x2ad   :  { %v339_v13 = vadd.f32 %v325_v54, %v277_v10  ;;  %376 = vmax.xlane.f32.xlu1 %v375_v11  ;;  %v359_v14 = vsel %vm343_vm5, %v335_v3, %v351_v7 }
 0x2ae   :  { %v367_v15 = vadd.f32 %v359_v14, %v3283_v9 }
 0x2af   :  { %vm347_vm0 = vcmp.gt.f32.partialorder %v339_v13, 0.0  ;;  %v355_v20 = vmul.f32 0.2, %v339_v13 }
 0x2b0   :  { %v262_v24 = vpop.permute.xlu1 %261  ;;  %v379_v26 = vsel %vm378_vm6, %v367_v15, -inf }
 0x2b1   :  { %v336_v28 = vadd.f32 %v321_v22, %v262_v24  ;;  %380 = vmax.xlane.f32.xlu0 %v379_v26  ;;  %389 = vmax.xlane.f32.xlu1 %v388_v27  ;;  %v363_v29 = vsel %vm347_vm0, %v339_v13, %v355_v20  ;;  %vm3320_vm0 = vmpackc.low %vm478_vm8, %vm3199_vm11 }
 0x2b2   :  { %v371_v33 = vadd.f32 %v363_v29, %v3283_v9 }
 0x2b3   :  { %vm344_vm1 = vcmp.gt.f32.partialorder %v336_v28, 0.0  ;;  %v352_v34 = vmul.f32 0.2, %v336_v28 }
 0x2b4   :  { %v284_v39 = vpop.permute.xlu1 %283  ;;  %v391_v40 = vsel %vm378_vm6, %v371_v33, -inf }
 0x2b5   :  { %v340_v42 = vadd.f32 %v329_v38, %v284_v39  ;;  %392 = vmax.xlane.f32.xlu1 %v391_v40  ;;  %v360_v44 = vsel %vm344_vm1, %v336_v28, %v352_v34 }
 0x2b6   :  { %v368_v45 = vadd.f32 %v360_v44, %v3279_v62 }
 0x2b7   :  { %vm348_vm2 = vcmp.gt.f32.partialorder %v340_v42, 0.0  ;;  %v356_v46 = vmul.f32 0.2, %v340_v42 }
 0x2b8   :  { %v266_v47 = vpop.permute.xlu1 %265  ;;  %v382_v49 = vsel %vm374_vm4, %v368_v45, -inf }
 0x2b9   :  { %v337_v50 = vadd.f32 %v321_v22, %v266_v47  ;;  %383 = vmax.xlane.f32.xlu1 %v382_v49  ;;  %v364_v51 = vsel %vm348_vm2, %v340_v42, %v356_v46 }
 0x2ba   :  { %v372_v53 = vadd.f32 %v364_v51, %v3279_v62 }
 0x2bb   :  { %vm345_vm3 = vcmp.gt.f32.partialorder %v337_v50, 0.0  ;;  %v353_v54 = vmul.f32 0.2, %v337_v50 }
 0x2bc   :  { %v288_v55 = vpop.permute.xlu1 %287  ;;  %v394_v56 = vsel %vm374_vm4, %v372_v53, -inf }
 0x2bd   :  { %v341_v57 = vadd.f32 %v329_v38, %v288_v55  ;;  %395 = vmax.xlane.f32.xlu1 %v394_v56  ;;  %v361_v58 = vsel %vm345_vm3, %v337_v50, %v353_v54 }
 0x2be   :  { %v369_v59 = vadd.f32 %v361_v58, %v3283_v9 }
 0x2bf   :  { %vm349_vm5 = vcmp.gt.f32.partialorder %v341_v57, 0.0  ;;  %v357_v60 = vmul.f32 0.2, %v341_v57 }
 0x2c0   :  { %v385_v61 = vsel %vm378_vm6, %v369_v59, -inf }
 0x2c1   :  { %386 = vmax.xlane.f32.xlu0 %v385_v61  ;;  %v365_v63 = vsel %vm349_vm5, %v341_v57, %v357_v60  ;;  %v838_v60 = vld [vmem:[%s3695_s3 + $0x10] sm:$0xff] }
 0x2c2   :  { %v373_v0 = vadd.f32 %v365_v63, %v3283_v9 }
 0x2c4   :  { %v397_v1 = vsel %vm378_vm6, %v373_v0, -inf }
 0x2c5   :  { %398 = vmax.xlane.f32.xlu1 %v397_v1 }
 0x33a   :  { %v377_v2 = vpop.xlane.xlu1 %376 }
 0x33b   :  { %v400_v3 = vsub.f32 %v366_v6, %v377_v2 }
 0x33d   :  { %v408_v4 = vmul.f32 1.442695, %v400_v3 }
 0x33e   :  { %v381_v5 = vpop.xlane.xlu0 %380  ;;  %v390_v7 = vpop.xlane.xlu1 %389 }
 0x33f   :  { %3017 = vpow2.f32 %v408_v4  ;;  %v401_v8 = vsub.f32 %v367_v15, %v381_v5  ;;  %v404_v10 = vsub.f32 %v370_v12, %v390_v7 }
 0x341   :  { %v410_v11 = vmul.f32 1.442695, %v401_v8  ;;  %v416_v13 = vmul.f32 1.442695, %v404_v10 }
 0x342   :  { %v393_v14 = vpop.xlane.xlu1 %392 }
 0x343   :  { %3019 = vpow2.f32 %v410_v11  ;;  %v405_v20 = vsub.f32 %v371_v33, %v393_v14  ;;  %v1634_v14 = vld [vmem:[%s3695_s3 + $0x78] sm:$0xff] }
 0x344   :  { %3021 = vpow2.f32 %v416_v13 }
 0x345   :  { %v418_v22 = vmul.f32 1.442695, %v405_v20 }
 0x346   :  { %v384_v23 = vpop.xlane.xlu1 %383 }
 0x347   :  { %3023 = vpow2.f32 %v418_v22  ;;  %v402_v24 = vsub.f32 %v368_v45, %v384_v23 }
 0x349   :  { %v3018_v26 = vpop.eup %3017  ;;  %v412_v27 = vmul.f32 1.442695, %v402_v24 }
 0x34a   :  { %v396_v28 = vpop.xlane.xlu1 %395  ;;  %v424_v6 = vsel %vm374_vm4, %v3018_v26, 0.0 }
 0x34b   :  { %3025 = vpow2.f32 %v412_v27  ;;  %v406_v29 = vsub.f32 %v372_v53, %v396_v28  ;;  %425 = vadd.xlane.f32.xlu0 %v424_v6 }
 0x34d   :  { %v3020_v15 = vpop.eup %3019  ;;  %v420_v12 = vmul.f32 1.442695, %v406_v29 }
 0x34e   :  { %v3022_v34 = vpop.eup %3021  ;;  %v387_v38 = vpop.xlane.xlu0 %386  ;;  %v427_v39 = vsel %vm378_vm6, %v3020_v15, 0.0 }
 0x34f   :  { %3027 = vpow2.f32 %v420_v12  ;;  %v403_v33 = vsub.f32 %v369_v59, %v387_v38  ;;  %428 = vadd.xlane.f32.xlu1 %v427_v39  ;;  %v436_v40 = vsel %vm374_vm4, %v3022_v34, 0.0  ;;  %v837_v59 = vld [vmem:[%s3695_s3 + $0x8] sm:$0xff] }
 0x350   :  { %437 = vadd.xlane.f32.xlu0 %v436_v40  ;;  %v2859_v61 = vpack.c.bf16 %v838_v60, %v837_v59  ;;  %v841_v39 = vld [vmem:[%s3695_s3 + $0x28] sm:$0xff] }
 0x351   :  { %v3024_v42 = vpop.eup %3023  ;;  %v414_v44 = vmul.f32 1.442695, %v403_v33  ;;  %v842_v33 = vld [vmem:[%s3695_s3 + $0x30] sm:$0xff] }
 0x352   :  { %v399_v45 = vpop.xlane.xlu1 %398  ;;  %v439_v46 = vsel %vm378_vm6, %v3024_v42, 0.0  ;;  %2860 = vmatprep.subr.bf16.mxu1 %v2859_v61  ;;  %v2867_v40 = vpack.c.bf16 %v842_v33, %v841_v39 }
 0x353   :  { %3029 = vpow2.f32 %v414_v44  ;;  %v407_v47 = vsub.f32 %v373_v0, %v399_v45  ;;  %440 = vadd.xlane.f32.xlu1 %v439_v46  ;;  %v844_v44 = vld [vmem:[%s3695_s3 + $0x40] sm:$0xff]  ;;  %v845_v46 = vld [vmem:[%s3695_s3 + $0xc8] sm:$0xff] }
 0x355   :  { %v3026_v49 = vpop.eup %3025  ;;  %v422_v50 = vmul.f32 1.442695, %v407_v47  ;;  %v846_v47 = vld [vmem:[%s3695_s3 + $0xd0] sm:$0xff] }
 0x356   :  { %v430_v51 = vsel %vm374_vm4, %v3026_v49, 0.0 }
 0x357   :  { %3031 = vpow2.f32 %v422_v50  ;;  %431 = vadd.xlane.f32.xlu0 %v430_v51  ;;  %v2875_v50 = vpack.c.bf16 %v846_v47, %v845_v46  ;;  %v848_v51 = vld [vmem:[%s3695_s3 + $0xe0] sm:$0xff] }
 0x359   :  { %v3028_v53 = vpop.eup %3027 }
 0x35a   :  { %v442_v54 = vsel %vm374_vm4, %v3028_v53, 0.0 }
 0x35b   :  { %443 = vadd.xlane.f32.xlu1 %v442_v54  ;;  %v849_v54 = vld [vmem:[%s3695_s3 + $0xe8] sm:$0xff] }
 0x35d   :  { %v3030_v55 = vpop.eup %3029 }
 0x35e   :  { %v433_v56 = vsel %vm378_vm6, %v3030_v55, 0.0 }
 0x35f   :  { %434 = vadd.xlane.f32.xlu0 %v433_v56 }
 0x361   :  { %v3032_v57 = vpop.eup %3031 }
 0x362   :  { %v445_v58 = vsel %vm378_vm6, %v3032_v57, 0.0 }
 0x363   :  { %446 = vadd.xlane.f32.xlu1 %v445_v58  ;;  %v852_v58 = vld [vmem:[%s3695_s3 + $0x100] sm:$0xff] }
 0x3d8   :  { %v426_v63 = vpop.xlane.xlu0 %425 }
 0x3d9   :  { %3033 = vrcp.f32 %v426_v63 }
 0x3dc   :  { %v429_v0 = vpop.xlane.xlu1 %428 }
 0x3dd   :  { %v438_v1 = vpop.xlane.xlu0 %437  ;;  %3035 = vrcp.f32 %v429_v0  ;;  %v2433_v0 = vld [vmem:[%s3695_s3 + $0x148] ss:$0 sm:$0xff] }
 0x3de   :  { %3037 = vrcp.f32 %v438_v1 }
 0x3e0   :  { %v441_v2 = vpop.xlane.xlu1 %440 }
 0x3e1   :  { %3039 = vrcp.f32 %v441_v2 }
 0x3e3   :  { %v3034_v3 = vpop.eup %3033 }
 0x3e4   :  { %v432_v4 = vpop.xlane.xlu0 %431  ;;  %v456_v5 = vmul.f32 %v3034_v3, %v3018_v26  ;;  %v2434_v3 = vld [vmem:[%s3695_s3 + $0x149] ss:$0 sm:$0xff] }
 0x3e5   :  { %3041 = vrcp.f32 %v432_v4 }
 0x3e6   :  { %2627 = vmatprep.mubr.msk.f32.mxu0 %vm374_vm4, %v456_v5 }
 0x3e7   :  { %v3036_v7 = vpop.eup %3035 }
 0x3e8   :  { %v3038_v8 = vpop.eup %3037  ;;  %v457_v10 = vmul.f32 %v3036_v7, %v3020_v15  ;;  %v444_v11 = vpop.xlane.xlu1 %443 }
 0x3e9   :  { %3043 = vrcp.f32 %v444_v11  ;;  %v460_v13 = vmul.f32 %v3038_v8, %v3022_v34  ;;  %v839_v34 = vld [vmem:[%s3695_s3 + $0x18] sm:$0xff] }
 0x3ea   :  { %2628 = vmatmul.mubr.msk.f32.vlgmr.msra.gmra.mrb[2].mxu0 %vm374_vm4, %v457_v10 }
 0x3eb   :  { %2852 = vmatpush3.bf16.msk.msra.mxu0 %vm3234_vm15, %v3226_v30  ;;  %2634 = vmatprep.mubr.msk.f32.mxu0 %vm374_vm4, %v460_v13  ;;  %v3040_v22 = vpop.eup %3039 }
 0x3ec   :  { %2855 = vmatprep.subr.msk.bf16.mxu0 %vm3320_vm0, %v3228_v31  ;;  %v435_v20 = vpop.xlane.xlu0 %434  ;;  %v461_v24 = vmul.f32 %v3040_v22, %v3024_v42  ;;  %v843_v42 = vld [vmem:[%s3695_s3 + $0x38] sm:$0xff] }
 0x3ed   :  { %3045 = vrcp.f32 %v435_v20  ;;  %v2871_v45 = vpack.c.bf16 %v844_v44, %v843_v42 }
 0x3ef   :  { %v3042_v23 = vpop.eup %3041 }
 0x3f0   :  { %v447_v26 = vpop.xlane.xlu1 %446  ;;  %v458_v27 = vmul.f32 %v3042_v23, %v3026_v49  ;;  %v847_v49 = vld [vmem:[%s3695_s3 + $0xd8] sm:$0xff] }
 0x3f1   :  { %3047 = vrcp.f32 %v447_v26 }
 0x3f2   :  { %2620 = vmatprep.mubr.msk.f32.mxu1 %vm374_vm4, %v458_v27  ;;  %2635 = vmatmul.mubr.msk.f32.vlgmr.msra.gmra.mrb[2].mxu0 %vm374_vm4, %v461_v24 }
 0x3f3   :  { %v3044_v28 = vpop.eup %3043  ;;  %2858 = vmatpush3.bf16.msk.msra.mxu0 %vm3320_vm0, %v3228_v31  ;;  %v840_v31 = vld [vmem:[%s3695_s3 + $0x20] sm:$0xff] }
 0x3f4   :  { %v462_v30 = vmul.f32 %v3044_v28, %v3028_v53  ;;  %v2863_v38 = vpack.c.bf16 %v840_v31, %v839_v34  ;;  %v2879_v53 = vpack.c.bf16 %v848_v51, %v847_v49  ;;  %2876 = vmatprep.subr.bf16.mxu0 %v2875_v50 }
 0x3f6   :  { %2641 = vmatprep.mubr.msk.f32.mxu0 %vm374_vm4, %v462_v30 }
 0x3f7   :  { %v3046_v6 = vpop.eup %3045 }
 0x3f8   :  { %v459_v29 = vmul.f32 %v3046_v6, %v3030_v55  ;;  %v850_v55 = vld [vmem:[%s3695_s3 + $0xf0] sm:$0xff] }
 0x3f9   :  { %v2883_v56 = vpack.c.bf16 %v850_v55, %v849_v54 }
 0x3fa   :  { %2621 = vmatmul.mubr.msk.f32.vlgmr.msra.gmra.mrb[2].mxu1 %vm374_vm4, %v459_v29 }
 0x3fb   :  { %v3048_v15 = vpop.eup %3047  ;;  %2862 = vmatpush3.bf16.msra.mxu1 %v2859_v61 }
 0x3fc   :  { %v463_v12 = vmul.f32 %v3048_v15, %v3032_v57  ;;  %2864 = vmatprep.subr.bf16.mxu1 %v2863_v38  ;;  %v851_v57 = vld [vmem:[%s3695_s3 + $0xf8] sm:$0xff] }
 0x3fd   :  { %v2887_v59 = vpack.c.bf16 %v852_v58, %v851_v57 }
 0x3fe   :  { %2642 = vmatmul.mubr.msk.f32.vlgmr.msra.gmra.mrb[2].mxu0 %vm374_vm4, %v463_v12 }
 0x3ff   :  { %2866 = vmatpush3.bf16.msra.mxu1 %v2863_v38  ;;  %2878 = vmatpush3.bf16.msra.mxu0 %v2875_v50 }
 0x400   :  { %2868 = vmatprep.subr.bf16.mxu1 %v2867_v40  ;;  %2880 = vmatprep.subr.bf16.mxu0 %v2879_v53 }
 0x403   :  { %2870 = vmatpush3.bf16.msra.mxu1 %v2867_v40  ;;  %2882 = vmatpush3.bf16.msra.mxu0 %v2879_v53 }
 0x404   :  { %2872 = vmatprep.subr.bf16.mxu1 %v2871_v45  ;;  %2884 = vmatprep.subr.bf16.mxu0 %v2883_v56 }
 0x407   :  { %2874 = vmatpush3.bf16.msra.mxu1 %v2871_v45  ;;  %2886 = vmatpush3.bf16.msra.mxu0 %v2883_v56 }
 0x408   :  { %2888 = vmatprep.subr.bf16.mxu0 %v2887_v59 }
 0x40b   :  { %2890 = vmatpush3.bf16.msra.mxu0 %v2887_v59 }
 0x4cd   :  { %v2622_v60 = vpop.f32.mrb[2].mxu1 }
 0x4ce   :  { %v548_v61 = vpop.f32.mrb[3].mxu1 }
 0x4d1   :  { %v2643_v63 = vpop.f32.mrb[2].mxu0 }
 0x4d2   :  { %v2993_v1 = vadd.f32 %v2643_v63, %v2622_v60  ;;  %v810_v2 = vpop.f32.mrb[3].mxu0 }
 0x4d3   :  { %v2994_v4 = vadd.f32 %v810_v2, %v548_v61 }
 0x4d4   :  { %v828_v5 = vmul.f32 %v2993_v1, %v2433_v0 }
 0x4d5   :  { %v827_v7 = vmul.f32 %v2994_v4, %v2433_v0 }
 0x4d6   :  { %v834_v8 = vadd.f32 %v2434_v3, %v828_v5 }
 0x4d7   :  { %v833_v10 = vadd.f32 %v2434_v3, %v827_v7 }
 0x4d8   :  { %v836_v13 = vmax.f32 %v834_v8, 0.0 }
 0x4d9   :  { %v835_v11 = vmax.f32 %v833_v10, 0.0 }
 0x4db   :  { %2660 = vmatprep.mubr.msk.f32.mxu1 %vm131_vm12, %v835_v11 }
 0x4dc   :  { %2661 = vmatmul.mubr.msk.f32.vlgmr.msra.gmra.mrb[4].mxu1 %vm131_vm12, %v836_v13 }
 0x5af   :  { %v2662_v20 = vpop.f32.mrb[4].mxu1 }
 0x5b0   :  { %v925_v22 = vpop.f32.mrb[5].mxu1  ;;  %v1267_v23 = vsel %vm3190_vm7, %v2662_v20, 0.0  ;;  %v1265_v24 = vsel %vm27_vm10, %v2662_v20, 0.0  ;;  %v1437_v26 = vsel %vm3194_vm9, %v2662_v20, 0.0  ;;  %v1525_v27 = vsel %vm3199_vm11, %v2662_v20, 0.0 }
 0x5b1   :  { %2679 = vmatprep.mubr.msk.f32.mxu0 %vm131_vm12, %v925_v22  ;;  %v2891_v28 = vpack.c.bf16 %v1267_v23, %v925_v22  ;;  %v3399_v30 = vpack.c.bf16 %v1265_v24, %v925_v22  ;;  %v3401_v6 = vpack.c.bf16 %v1437_v26, %v925_v22  ;;  %v3403_v29 = vpack.c.bf16 %v1525_v27, %v925_v22 }
 0x5b2   :  { %2680 = vmatmul.mubr.msk.f32.vlgmr.msra.gmra.mrb[4].mxu0 %vm131_vm12, %v2662_v20 }
 0x5b3   :  { %2893 = vmatprep.subr.msk.bf16.mxu1 %vm3206_vm13, %v2891_v28 }
 0x5b4   :  { %2896 = vmatpush3.bf16.msk.msra.mxu1 %vm3206_vm13, %v2891_v28 }
 0x5b5   :  { %2899 = vmatprep.subr.msk.bf16.mxu1 %vm3217_vm14, %v3399_v30 }
 0x685   :  { %v2681_v16 = vpop.f32.mrb[4].mxu0 }
 0x686   :  { %v1006_v17 = vpop.f32.mrb[5].mxu0 }
 0x687   :  { %1015 = vxpose.xlu0.b32.start [1/2] (short) (narrow) %v1006_v17, 8 }
 0x68b   :  { %1016 = vxpose.xlu0.b32.end [2/2] (short) (narrow) %v2681_v16, 8 }
 0x707   :  { %v1031_v18 = vpop.trf.xlu0 }
 0x708   :  { %v1061_v19 = vrot.slane %v1031_v18, %v258_v41  ;;  %v1050_v15 = vrot.slane %v1031_v18, %v247_v37  ;;  %v1072_v21 = vrot.slane %v1031_v18, %v269_v36  ;;  %v1083_v12 = vrot.slane %v1031_v18, %v280_v43 }
 0x709   :  { %v1098_v34 = vrot.slane %v1031_v18, %v3264_v48 }
 0x70a   :  { %1063 = vbcast.lane.b32.xlu1 %v1061_v19, 256 }
 0x70b   :  { %v1099_v41 = vcombine.high %v1098_v34, %v1098_v34  ;;  %v1106_v36 = vrot.slane %v1098_v34, %v3264_v48 }
 0x70d   :  { %v1113_v31 = vrot.slane %v1099_v41, %v3264_v48  ;;  %v1119_v46 = vrot.slane %v1106_v36, %v3269_v52  ;;  %v1114_v54 = vcombine.high %v1106_v36, %v1106_v36 }
 0x70e   :  { %1067 = vbcast.lane.b32.xlu1 %v1061_v19, 264 }
 0x70f   :  { %v1123_v38 = vrot.slane %v1113_v31, %v3269_v52  ;;  %v1127_v61 = vrot.slane %v1114_v54, %v3269_v52  ;;  %v1115_v5 = vcombine.high %v1113_v31, %v1113_v31 }
 0x711   :  { %v1131_v22 = vrot.slane %v1115_v5, %v3269_v52 }
 0x712   :  { %1052 = vbcast.lane.b32.xlu1 %v1050_v15, 256 }
 0x716   :  { %1056 = vbcast.lane.b32.xlu1 %v1050_v15, 264 }
 0x71a   :  { %1074 = vbcast.lane.b32.xlu1 %v1072_v21, 256 }
 0x71e   :  { %1078 = vbcast.lane.b32.xlu1 %v1072_v21, 264 }
 0x722   :  { %1085 = vbcast.lane.b32.xlu1 %v1083_v12, 256 }
 0x726   :  { %1089 = vbcast.lane.b32.xlu1 %v1083_v12, 264 }
 0x77c   :  { %v1064_v37 = vpop.permute.xlu1 %1063 }
 0x77d   :  { %v1138_v39 = vadd.f32 %v1123_v38, %v1064_v37 }
 0x77f   :  { %vm1146_vm7 = vcmp.gt.f32.partialorder %v1138_v39, 0.0  ;;  %v1154_v33 = vmul.f32 0.2, %v1138_v39 }
 0x780   :  { %v1068_v40 = vpop.permute.xlu1 %1067 }
 0x781   :  { %v1139_v42 = vadd.f32 %v1123_v38, %v1068_v40  ;;  %v1162_v44 = vsel %vm1146_vm7, %v1138_v39, %v1154_v33  ;;  %vm2112_vm7 = vcmask 519168  }
 0x782   :  { %v3426_v43 = vadd.f32 %v1162_v44, %v3279_v62 }
 0x783   :  { %vm1147_vm9 = vcmp.gt.f32.partialorder %v1139_v42, 0.0  ;;  %v1155_v45 = vmul.f32 0.2, %v1139_v42 }
 0x784   :  { %v1053_v47 = vpop.permute.xlu1 %1052  ;;  %v1182_v49 = vsel %vm374_vm4, %v3426_v43, -inf }
 0x785   :  { %v1136_v50 = vadd.f32 %v1119_v46, %v1053_v47  ;;  %1183 = vmax.xlane.f32.xlu1 %v1182_v49  ;;  %v1163_v51 = vsel %vm1147_vm9, %v1139_v42, %v1155_v45  ;;  %vm2397_vm9 = vcmask 9216  }
 0x786   :  { %v1171_v53 = vadd.f32 %v1163_v51, %v3283_v9 }
 0x787   :  { %vm1144_vm10 = vcmp.gt.f32.partialorder %v1136_v50, 0.0  ;;  %v1152_v48 = vmul.f32 0.2, %v1136_v50 }
 0x788   :  { %v1057_v55 = vpop.permute.xlu1 %1056  ;;  %v1185_v56 = vsel %vm378_vm6, %v1171_v53, -inf }
 0x789   :  { %v1137_v57 = vadd.f32 %v1119_v46, %v1057_v55  ;;  %1186 = vmax.xlane.f32.xlu0 %v1185_v56  ;;  %v1160_v58 = vsel %vm1144_vm10, %v1136_v50, %v1152_v48 }
 0x78a   :  { %v1168_v59 = vadd.f32 %v1160_v58, %v3279_v62 }
 0x78b   :  { %vm1145_vm11 = vcmp.gt.f32.partialorder %v1137_v57, 0.0  ;;  %v1153_v60 = vmul.f32 0.2, %v1137_v57 }
 0x78c   :  { %v1075_v63 = vpop.permute.xlu1 %1074  ;;  %v1176_v0 = vsel %vm374_vm4, %v1168_v59, -inf }
 0x78d   :  { %v1140_v1 = vadd.f32 %v1127_v61, %v1075_v63  ;;  %1177 = vmax.xlane.f32.xlu1 %v1176_v0  ;;  %v1161_v2 = vsel %vm1145_vm11, %v1137_v57, %v1153_v60 }
 0x78e   :  { %v1169_v3 = vadd.f32 %v1161_v2, %v3283_v9 }
 0x78f   :  { %vm1148_vm13 = vcmp.gt.f32.partialorder %v1140_v1, 0.0  ;;  %v1156_v4 = vmul.f32 0.2, %v1140_v1 }
 0x790   :  { %v1079_v7 = vpop.permute.xlu1 %1078  ;;  %v1179_v8 = vsel %vm378_vm6, %v1169_v3, -inf }
 0x791   :  { %v1141_v10 = vadd.f32 %v1127_v61, %v1079_v7  ;;  %1180 = vmax.xlane.f32.xlu1 %v1179_v8  ;;  %v1164_v11 = vsel %vm1148_vm13, %v1140_v1, %v1156_v4 }
 0x792   :  { %v1172_v13 = vadd.f32 %v1164_v11, %v3279_v62 }
 0x793   :  { %vm1149_vm1 = vcmp.gt.f32.partialorder %v1141_v10, 0.0  ;;  %v1157_v20 = vmul.f32 0.2, %v1141_v10 }
 0x794   :  { %v1086_v23 = vpop.permute.xlu1 %1085  ;;  %v1188_v24 = vsel %vm374_vm4, %v1172_v13, -inf }
 0x795   :  { %v1142_v26 = vadd.f32 %v1131_v22, %v1086_v23  ;;  %1189 = vmax.xlane.f32.xlu1 %v1188_v24  ;;  %v1165_v27 = vsel %vm1149_vm1, %v1141_v10, %v1157_v20 }
 0x796   :  { %v1173_v28 = vadd.f32 %v1165_v27, %v3283_v9  ;;  %v1629_v27 = vld [vmem:[%s3695_s3 + $0x50] sm:$0xff] }
 0x797   :  { %vm1150_vm2 = vcmp.gt.f32.partialorder %v1142_v26, 0.0  ;;  %v1158_v16 = vmul.f32 0.2, %v1142_v26 }
 0x798   :  { %v1090_v17 = vpop.permute.xlu1 %1089  ;;  %v1191_v18 = vsel %vm378_vm6, %v1173_v28, -inf }
 0x799   :  { %v1143_v19 = vadd.f32 %v1131_v22, %v1090_v17  ;;  %1192 = vmax.xlane.f32.xlu1 %v1191_v18  ;;  %v1166_v15 = vsel %vm1150_vm2, %v1142_v26, %v1158_v16  ;;  %v1628_v26 = vld [vmem:[%s3695_s3 + $0x48] sm:$0xff]  ;;  %v1631_v17 = vld [vmem:[%s3695_s3 + $0x60] sm:$0xff] }
 0x79a   :  { %v1174_v21 = vadd.f32 %v1166_v15, %v3279_v62  ;;  %v2915_v16 = vpack.c.bf16 %v1629_v27, %v1628_v26 }
 0x79b   :  { %vm1151_vm3 = vcmp.gt.f32.partialorder %v1143_v19, 0.0  ;;  %v1159_v12 = vmul.f32 0.2, %v1143_v19 }
 0x79c   :  { %v1194_v34 = vsel %vm374_vm4, %v1174_v21, -inf  ;;  %2916 = vmatprep.subr.bf16.mxu0 %v2915_v16 }
 0x79d   :  { %1195 = vmax.xlane.f32.xlu0 %v1194_v34  ;;  %v1167_v41 = vsel %vm1151_vm3, %v1143_v19, %v1159_v12  ;;  %2918 = vmatpush3.bf16.msra.mxu0 %v2915_v16 }
 0x79e   :  { %v1175_v31 = vadd.f32 %v1167_v41, %v3283_v9 }
 0x7a0   :  { %v1197_v38 = vsel %vm378_vm6, %v1175_v31, -inf }
 0x7a1   :  { %1198 = vmax.xlane.f32.xlu1 %v1197_v38 }
 0x812   :  { %v1184_v37 = vpop.xlane.xlu1 %1183 }
 0x813   :  { %v1202_v39 = vsub.f32 %v3426_v43, %v1184_v37 }
 0x815   :  { %v1212_v33 = vmul.f32 1.442695, %v1202_v39 }
 0x816   :  { %v1187_v36 = vpop.xlane.xlu0 %1186 }
 0x817   :  { %3049 = vpow2.f32 %v1212_v33  ;;  %v1203_v40 = vsub.f32 %v1171_v53, %v1187_v36 }
 0x819   :  { %v1214_v42 = vmul.f32 1.442695, %v1203_v40 }
 0x81a   :  { %v1178_v44 = vpop.xlane.xlu1 %1177 }
 0x81b   :  { %3051 = vpow2.f32 %v1214_v42  ;;  %v1200_v45 = vsub.f32 %v1168_v59, %v1178_v44 }
 0x81d   :  { %v1208_v46 = vmul.f32 1.442695, %v1200_v45 }
 0x81e   :  { %v1181_v47 = vpop.xlane.xlu1 %1180 }
 0x81f   :  { %3053 = vpow2.f32 %v1208_v46  ;;  %v1201_v49 = vsub.f32 %v1169_v3, %v1181_v47 }
 0x821   :  { %v3050_v50 = vpop.eup %3049  ;;  %v1210_v51 = vmul.f32 1.442695, %v1201_v49 }
 0x822   :  { %v1190_v48 = vpop.xlane.xlu1 %1189  ;;  %v1230_v54 = vsel %vm374_vm4, %v3050_v50, 0.0 }
 0x823   :  { %3055 = vpow2.f32 %v1210_v51  ;;  %v1204_v55 = vsub.f32 %v1172_v13, %v1190_v48  ;;  %1231 = vadd.xlane.f32.xlu0 %v1230_v54  ;;  %v1632_v51 = vld [vmem:[%s3695_s3 + $0x68] sm:$0xff]  ;;  %v1633_v48 = vld [vmem:[%s3695_s3 + $0x70] sm:$0xff] }
 0x824   :  { %v2923_v54 = vpack.c.bf16 %v1633_v48, %v1632_v51 }
 0x825   :  { %v3052_v43 = vpop.eup %3051  ;;  %v1216_v56 = vmul.f32 1.442695, %v1204_v55 }
 0x826   :  { %v1193_v57 = vpop.xlane.xlu1 %1192  ;;  %v1233_v53 = vsel %vm378_vm6, %v3052_v43, 0.0 }
 0x827   :  { %3057 = vpow2.f32 %v1216_v56  ;;  %v1205_v58 = vsub.f32 %v1173_v28, %v1193_v57  ;;  %1234 = vadd.xlane.f32.xlu1 %v1233_v53  ;;  %v1630_v28 = vld [vmem:[%s3695_s3 + $0x58] sm:$0xff]  ;;  %v1637_v56 = vld [vmem:[%s3695_s3 + $0x110] sm:$0xff] }
 0x828   :  { %v2919_v18 = vpack.c.bf16 %v1631_v17, %v1630_v28  ;;  %v1638_v57 = vld [vmem:[%s3695_s3 + $0x118] sm:$0xff]  ;;  %v1840_v17 = vsub.s32 1, %v3249_v35 }
 0x829   :  { %v3054_v59 = vpop.eup %3053  ;;  %v1218_v60 = vmul.f32 1.442695, %v1205_v58  ;;  %v1639_v58 = vld [vmem:[%s3695_s3 + $0x120] sm:$0xff] }
 0x82a   :  { %v1196_v61 = vpop.xlane.xlu0 %1195  ;;  %v1224_v63 = vsel %vm374_vm4, %v3054_v59, 0.0  ;;  %2920 = vmatprep.subr.bf16.mxu0 %v2919_v18 }
 0x82b   :  { %3059 = vpow2.f32 %v1218_v60  ;;  %v1206_v0 = vsub.f32 %v1174_v21, %v1196_v61  ;;  %1225 = vadd.xlane.f32.xlu0 %v1224_v63  ;;  %2922 = vmatpush3.bf16.msra.mxu0 %v2919_v18  ;;  %v1640_v60 = vld [vmem:[%s3695_s3 + $0x128] sm:$0xff]  ;;  %v1641_v61 = vld [vmem:[%s3695_s3 + $0x130] sm:$0xff] }
 0x82c   :  { %2924 = vmatprep.subr.bf16.mxu0 %v2923_v54  ;;  %v2939_v63 = vpack.c.bf16 %v1641_v61, %v1640_v60  ;;  %v2144_v60 = vld [vmem:[%s3695_s3 + $0x160] sm:$0xff] }
 0x82d   :  { %v3056_v1 = vpop.eup %3055  ;;  %v1220_v2 = vmul.f32 1.442695, %v1206_v0  ;;  %v1642_v0 = vld [vmem:[%s3695_s3 + $0x138] sm:$0xff] }
 0x82e   :  { %v1199_v3 = vpop.xlane.xlu1 %1198  ;;  %v1227_v4 = vsel %vm378_vm6, %v3056_v1, 0.0 }
 0x82f   :  { %3061 = vpow2.f32 %v1220_v2  ;;  %v1207_v5 = vsub.f32 %v1175_v31, %v1199_v3  ;;  %1228 = vadd.xlane.f32.xlu1 %v1227_v4  ;;  %2926 = vmatpush3.bf16.msra.mxu0 %v2923_v54  ;;  %v2455_v3 = vld [vmem:[%s3695_s3 + $0x14a] ss:$0 sm:$0xff] }
 0x831   :  { %v3058_v7 = vpop.eup %3057  ;;  %v1222_v8 = vmul.f32 1.442695, %v1207_v5  ;;  %v2456_v5 = vld [vmem:[%s3695_s3 + $0x14b] ss:$0 sm:$0xff] }
 0x832   :  { %v1236_v10 = vsel %vm374_vm4, %v3058_v7, 0.0 }
 0x833   :  { %3063 = vpow2.f32 %v1222_v8  ;;  %1237 = vadd.xlane.f32.xlu0 %v1236_v10 }
 0x835   :  { %v3060_v11 = vpop.eup %3059 }
 0x836   :  { %v1239_v13 = vsel %vm378_vm6, %v3060_v11, 0.0 }
 0x837   :  { %1240 = vadd.xlane.f32.xlu1 %v1239_v13 }
 0x839   :  { %v3062_v20 = vpop.eup %3061 }
 0x83a   :  { %v1242_v22 = vsel %vm374_vm4, %v3062_v20, 0.0 }
 0x83b   :  { %1243 = vadd.xlane.f32.xlu0 %v1242_v22 }
 0x83d   :  { %v3064_v23 = vpop.eup %3063 }
 0x83e   :  { %v1245_v24 = vsel %vm378_vm6, %v3064_v23, 0.0 }
 0x83f   :  { %1246 = vadd.xlane.f32.xlu1 %v1245_v24 }
 0x8b0   :  { %v1232_v19 = vpop.xlane.xlu0 %1231 }
 0x8b1   :  { %3065 = vrcp.f32 %v1232_v19 }
 0x8b4   :  { %v1235_v15 = vpop.xlane.xlu1 %1234 }
 0x8b5   :  { %3067 = vrcp.f32 %v1235_v15 }
 0x8b8   :  { %v1226_v21 = vpop.xlane.xlu0 %1225 }
 0x8b9   :  { %3069 = vrcp.f32 %v1226_v21 }
 0x8bb   :  { %v3066_v12 = vpop.eup %3065 }
 0x8bc   :  { %v1229_v34 = vpop.xlane.xlu1 %1228  ;;  %v1258_v41 = vmul.f32 %v3066_v12, %v3050_v50 }
 0x8bd   :  { %3071 = vrcp.f32 %v1229_v34 }
 0x8be   :  { %2686 = vmatprep.mubr.msk.f32.mxu1 %vm374_vm4, %v1258_v41 }
 0x8bf   :  { %v3068_v31 = vpop.eup %3067 }
 0x8c0   :  { %v1259_v38 = vmul.f32 %v3068_v31, %v3052_v43  ;;  %v1238_v37 = vpop.xlane.xlu0 %1237  ;;  %v1636_v43 = vld [vmem:[%s3695_s3 + $0x108] sm:$0xff] }
 0x8c1   :  { %3073 = vrcp.f32 %v1238_v37  ;;  %v2931_v53 = vpack.c.bf16 %v1637_v56, %v1636_v43  ;;  %v3119_v56 = vmov 1  }
 0x8c2   :  { %2687 = vmatmul.mubr.msk.f32.vlgmr.msra.gmra.mrb[6].mxu1 %vm374_vm4, %v1259_v38 }
 0x8c3   :  { %v3070_v39 = vpop.eup %3069  ;;  %2902 = vmatpush3.bf16.msk.msra.mxu1 %vm3217_vm14, %v3399_v30  ;;  %vm3117_vm14 = vmmov 1  }
 0x8c4   :  { %2905 = vmatprep.subr.msk.bf16.mxu1 %vm3234_vm15, %v3401_v6  ;;  %v1241_v33 = vpop.xlane.xlu1 %1240  ;;  %v1256_v36 = vmul.f32 %v3070_v39, %v3054_v59  ;;  %v2935_v59 = vpack.c.bf16 %v1639_v58, %v1638_v57  ;;  %v3120_v57 = vmov 0.0|0.0   ;;  %v2142_v58 = vld [vmem:[%s3695_s3 + $0x150] sm:$0xff] }
 0x8c5   :  { %3075 = vrcp.f32 %v1241_v33 }
 0x8c6   :  { %2693 = vmatprep.mubr.msk.f32.mxu1 %vm374_vm4, %v1256_v36 }
 0x8c7   :  { %v3072_v40 = vpop.eup %3071 }
 0x8c8   :  { %v1257_v42 = vmul.f32 %v3072_v40, %v3056_v1  ;;  %v1244_v44 = vpop.xlane.xlu0 %1243  ;;  %v1643_v1 = vld [vmem:[%s3695_s3 + $0x140] sm:$0xff] }
 0x8c9   :  { %3077 = vrcp.f32 %v1244_v44  ;;  %v2943_v2 = vpack.c.bf16 %v1643_v1, %v1642_v0  ;;  %v2146_v1 = vld [vmem:[%s3695_s3 + $0x170] sm:$0xff] }
 0x8ca   :  { %2694 = vmatmul.mubr.msk.f32.vlgmr.msra.gmra.mrb[6].mxu1 %vm374_vm4, %v1257_v42 }
 0x8cb   :  { %v3074_v45 = vpop.eup %3073  ;;  %2908 = vmatpush3.bf16.msk.msra.mxu1 %vm3234_vm15, %v3401_v6  ;;  %vm3536_vm15 = vmpackc.low %vm478_vm8, %vm3117_vm14 }
 0x8cc   :  { %2911 = vmatprep.subr.msk.bf16.mxu1 %vm3320_vm0, %v3403_v29  ;;  %v1247_v25 = vpop.xlane.xlu1 %1246  ;;  %v1260_v30 = vmul.f32 %v3074_v45, %v3058_v7 }
 0x8cd   :  { %3079 = vrcp.f32 %v1247_v25 }
 0x8ce   :  { %2700 = vmatprep.mubr.msk.f32.mxu1 %vm374_vm4, %v1260_v30 }
 0x8cf   :  { %v3076_v46 = vpop.eup %3075 }
 0x8d0   :  { %v1261_v47 = vmul.f32 %v3076_v46, %v3060_v11 }
 0x8d2   :  { %2701 = vmatmul.mubr.msk.f32.vlgmr.msra.gmra.mrb[6].mxu1 %vm374_vm4, %v1261_v47 }
 0x8d3   :  { %v3078_v49 = vpop.eup %3077  ;;  %2914 = vmatpush3.bf16.msk.msra.mxu1 %vm3320_vm0, %v3403_v29  ;;  %v1635_v29 = vld [vmem:[%s3695_s3 + $0x80] sm:$0xff]  ;;  %vm1985_vm0 = vcmask 91136  }
 0x8d4   :  { %v1262_v32 = vmul.f32 %v3078_v49, %v3062_v20  ;;  %v2927_v55 = vpack.c.bf16 %v1635_v29, %v1634_v14  ;;  %2932 = vmatprep.subr.bf16.mxu1 %v2931_v53 }
 0x8d6   :  { %2707 = vmatprep.mubr.msk.f32.mxu1 %vm374_vm4, %v1262_v32  ;;  %2928 = vmatprep.subr.bf16.mxu0 %v2927_v55 }
 0x8d7   :  { %v3080_v6 = vpop.eup %3079  ;;  %2930 = vmatpush3.bf16.msra.mxu0 %v2927_v55 }
 0x8d8   :  { %v1263_v50 = vmul.f32 %v3080_v6, %v3064_v23  ;;  %v3118_v6 = vmov 0  }
 0x8da   :  { %2708 = vmatmul.mubr.msk.f32.vlgmr.msra.gmra.mrb[6].mxu1 %vm374_vm4, %v1263_v50 }
 0x8db   :  { %2934 = vmatpush3.bf16.msra.mxu1 %v2931_v53  ;;  %v3122_v53 = vmov 0.0  }
 0x8dc   :  { %2936 = vmatprep.subr.bf16.mxu1 %v2935_v59 }
 0x8df   :  { %2938 = vmatpush3.bf16.msra.mxu1 %v2935_v59  ;;  %v2143_v59 = vld [vmem:[%s3695_s3 + $0x158] sm:$0xff] }
 0x8e0   :  { %2940 = vmatprep.subr.bf16.mxu1 %v2939_v63  ;;  %v2970_v61 = vpack.c.bf16 %v2143_v59, %v2142_v58  ;;  %v2158_v59 = vld [vmem:[%s3695_s3 + $0x1d0] sm:$0xff] }
 0x8e3   :  { %2942 = vmatpush3.bf16.msra.mxu1 %v2939_v63  ;;  %v2145_v63 = vld [vmem:[%s3695_s3 + $0x168] sm:$0xff] }
 0x8e4   :  { %2944 = vmatprep.subr.bf16.mxu1 %v2943_v2  ;;  %v2973_v0 = vpack.c.bf16 %v2145_v63, %v2144_v60  ;;  %v2159_v60 = vld [vmem:[%s3695_s3 + $0x1d8] sm:$0xff]  ;;  %v2161_v63 = vld [vmem:[%s3695_s3 + $0x1e8] sm:$0xff] }
 0x8e7   :  { %2946 = vmatpush3.bf16.msra.mxu1 %v2943_v2  ;;  %v2147_v2 = vld [vmem:[%s3695_s3 + $0x178] sm:$0xff] }
 0x8e8   :  { %2969 = vmatprep.subr.bf16.mxu1 %v3120_v57 }
 0x9ad   :  { %v2709_v4 = vpop.f32.mrb[6].mxu1 }
 0x9ae   :  { %v1619_v7 = vmul.f32 %v2709_v4, %v2455_v3  ;;  %v1601_v8 = vpop.f32.mrb[7].mxu1 }
 0x9af   :  { %v1618_v10 = vmul.f32 %v2455_v3, %v1601_v8  ;;  %v2976_v3 = vpack.c.bf16 %v2147_v2, %v2146_v1 }
 0x9b0   :  { %v1625_v11 = vadd.f32 %v2456_v5, %v1619_v7  ;;  %v2464_v7 = vld [vmem:[%s3695_s3 + $0x14c] ss:$0 sm:$0xff] }
 0x9b1   :  { %v1624_v13 = vadd.f32 %v2456_v5, %v1618_v10 }
 0x9b2   :  { %v1627_v22 = vmax.f32 %v1625_v11, 0.0  ;;  %v2465_v11 = vld [vmem:[%s3695_s3 + $0x14d] ss:$0 sm:$0xff] }
 0x9b3   :  { %v1626_v20 = vmax.f32 %v1624_v13, 0.0 }
 0x9b5   :  { %2726 = vmatprep.mubr.msk.f32.mxu0 %vm131_vm12, %v1626_v20 }
 0x9b6   :  { %2727 = vmatmul.mubr.msk.f32.vlgmr.msra.gmra.mrb[6].mxu0 %vm131_vm12, %v1627_v22 }
 0xa89   :  { %v2728_v23 = vpop.f32.mrb[6].mxu0 }
 0xa8a   :  { %v1716_v24 = vpop.f32.mrb[7].mxu0 }
 0xa8b   :  { %v2947_v27 = vpack.c.bf16 %v2728_v23, %v1716_v24  ;;  %2745 = vmatprep.mubr.msk.f32.mxu1 %vm131_vm12, %v1716_v24 }
 0xa8c   :  { %2746 = vmatmul.mubr.msk.f32.vlgmr.msra.gmra.mrb[8].mxu1 %vm131_vm12, %v2728_v23 }
 0xa8d   :  { %2949 = vmatprep.subr.msk.bf16.mxu0 %vm3536_vm15, %v2947_v27  ;;  %2971 = vmatpush3.bf16.msra.mxu1 %v2970_v61  ;;  %v2982_v61 = vpack.c.bf16 %v2159_v60, %v2158_v59 }
 0xa8e   :  { %2952 = vmatpush3.bf16.msk.msra.mxu0 %vm3536_vm15, %v2947_v27  ;;  %2972 = vmatprep.subr.bf16.mxu1 %v3120_v57 }
 0xa8f   :  { %2953 = vmatprep.subr.bf16.mxu0 %v3120_v57 }
 0xa91   :  { %2974 = vmatpush3.bf16.msra.mxu1 %v2973_v0 }
 0xa92   :  { %2975 = vmatprep.subr.bf16.mxu1 %v3120_v57 }
 0xa95   :  { %2977 = vmatpush3.bf16.msra.mxu1 %v2976_v3 }
 0xa96   :  { %2978 = vmatprep.subr.bf16.mxu1 %v3120_v57 }
 0xb5f   :  { %v2747_v28 = vpop.f32.mrb[8].mxu1 }
 0xb60   :  { %v1797_v16 = vpop.f32.mrb[9].mxu1 }
 0xb61   :  { %1806 = vxpose.xlu0.b32.start [1/2] (short) (narrow) %v1797_v16, 8 }
 0xb65   :  { %1807 = vxpose.xlu0.b32.end [2/2] (short) (narrow) %v2747_v28, 8 }
 0xb8e   :  { %3014 = vset.pattern.permute.xlu0 %v3118_v6 }
 0xbe1   :  { %v1822_v18 = vpop.trf.xlu0 }
 0xbe2   :  { %v1841_v19 = vrot.slane %v1822_v18, %v1840_v17  ;;  %v1852_v15 = vrot.slane %v1822_v18, %v3269_v52 }
 0xbe4   :  { %1843 = vbcast.lane.b32.xlu1 %v1841_v19, 256 }
 0xbe8   :  { %1847 = vbcast.lane.b32.xlu1 %v1841_v19, 264 }
 0xc56   :  { %v1844_v21 = vpop.permute.xlu1 %1843 }
 0xc57   :  { %v1853_v12 = vadd.f32 %v1852_v15, %v1844_v21  ;;  %v2151_v21 = vld [vmem:[%s3695_s3 + $0x198] sm:$0xff] }
 0xc59   :  { %vm1855_vm8 = vcmp.gt.f32.partialorder %v1853_v12, 0.0  ;;  %v1857_v34 = vmul.f32 0.2, %v1853_v12 }
 0xc5a   :  { %v1848_v41 = vpop.permute.xlu1 %1847 }
 0xc5b   :  { %v1854_v31 = vadd.f32 %v1852_v15, %v1848_v41  ;;  %v1859_v38 = vsel %vm1855_vm8, %v1853_v12, %v1857_v34  ;;  %v2150_v15 = vld [vmem:[%s3695_s3 + $0x190] sm:$0xff] }
 0xc5c   :  { %v1861_v37 = vadd.f32 %v1859_v38, %v3279_v62 }
 0xc5d   :  { %vm1856_vm5 = vcmp.gt.f32.partialorder %v1854_v31, 0.0  ;;  %v1858_v39 = vmul.f32 0.2, %v1854_v31 }
 0xc5e   :  { %v1863_v33 = vsel %vm374_vm4, %v1861_v37, -inf }
 0xc5f   :  { %1864 = vmax.xlane.f32.xlu1 %v1863_v33  ;;  %v1860_v35 = vsel %vm1856_vm5, %v1854_v31, %v1858_v39  ;;  %v2958_v33 = vpack.c.bf16 %v2151_v21, %v2150_v15 }
 0xc60   :  { %v1862_v36 = vadd.f32 %v1860_v35, %v3283_v9  ;;  %v3557_v9 = vld [vmem:[%s3694_s2] sm:$0x3]  ;;  %s3091_s2 = scalar_lea.vmem %s2406_s29, 32 }
 0xc61   :  { %v1986_v32 = vsel %vm1985_vm0, %v3557_v9, 0.0  ;;  %p3092_p0 = scmp.ne.s32.totalorder %s2406_s29, %s3091_s2  ;;  %p3097_p2 = scmp.lt.s32.totalorder %s3091_s2, %s3091_s2 }
 0xc62   :  { %v1866_v40 = vsel %vm378_vm6, %v1862_v36, -inf }
 0xc63   :  { %1867 = vmax.xlane.f32.xlu0 %v1866_v40  ;;  %v2152_v40 = vld [vmem:[%s3695_s3 + $0x1a0] sm:$0xff]  ;;  %p3098_p3 = por %p3097_p2, %p3096_p1 }
 0xc65   :  { %p3099_p4 = pnand %p3098_p3, %p3092_p0 }
 0xc67   :  { %1987 = vadd.xlane.f32.xlu0 %v1986_v32 }
 0xcec   :  { %v1865_v52 = vpop.xlane.xlu1 %1864 }
 0xced   :  { %v1869_v42 = vsub.f32 %v1861_v37, %v1865_v52  ;;  %v2153_v52 = vld [vmem:[%s3695_s3 + $0x1a8] sm:$0xff] }
 0xcee   :  { %v2961_v26 = vpack.c.bf16 %v2153_v52, %v2152_v40 }
 0xcef   :  { %v1871_v44 = vmul.f32 1.442695, %v1869_v42 }
 0xcf0   :  { %v1868_v45 = vpop.xlane.xlu0 %1867 }
 0xcf1   :  { %3081 = vpow2.f32 %v1871_v44  ;;  %v1870_v25 = vsub.f32 %v1862_v36, %v1868_v45 }
 0xcf3   :  { %v1873_v30 = vmul.f32 1.442695, %v1870_v25 }
 0xcf4   :  { %v3590_v4 = vpop.xlane.xlu0 %1987 }
 0xcf5   :  { %3083 = vpow2.f32 %v1873_v30  ;;  %v2154_v30 = vld [vmem:[%s3695_s3 + $0x1b0] sm:$0xff] }
 0xcfb   :  { %v3082_v62 = vpop.eup %3081 }
 0xcfc   :  { %v1875_v46 = vsel %vm374_vm4, %v3082_v62, 0.0 }
 0xcfd   :  { %1876 = vadd.xlane.f32.xlu1 %v1875_v46 }
 0xcff   :  { %v3084_v47 = vpop.eup %3083 }
 0xd00   :  { %v1878_v49 = vsel %vm378_vm6, %v3084_v47, 0.0  ;;  %vm3121_vm6 = vmmov 0  }
 0xd01   :  { %1879 = vadd.xlane.f32.xlu1 %v1878_v49  ;;  %2797 = vmatprep.mubr.msk.f32.mxu1 %vm3121_vm6, %v3122_v53 }
 0xd34   :  { %2067 = vxpose.xlu1.b32.start.end [1/1] (short) (narrow) %v3557_v9, 16 }
 0xd52   :  { %3015 = vset.pattern.permute.xlu1 %v3118_v6  ;;  %v2156_v6 = vld [vmem:[%s3695_s3 + $0x1c0] sm:$0xff] }
 0xd8a   :  { %v1877_v50 = vpop.xlane.xlu1 %1876 }
 0xd8b   :  { %3085 = vrcp.f32 %v1877_v50  ;;  %v2157_v50 = vld [vmem:[%s3695_s3 + $0x1c8] sm:$0xff] }
 0xd8e   :  { %v1880_v51 = vpop.xlane.xlu1 %1879 }
 0xd8f   :  { %3087 = vrcp.f32 %v1880_v51 }
 0xd90   :  { %3089 = vrcp.f32 %v3590_v4  ;;  %v2164_v4 = vld [vmem:[%s3695_s3 + $0x200] sm:$0xff] }
 0xd95   :  { %v3086_v48 = vpop.eup %3085 }
 0xd96   :  { %v1883_v54 = vmul.f32 %v3086_v48, %v3082_v62  ;;  %v2155_v62 = vld [vmem:[%s3695_s3 + $0x1b8] sm:$0xff] }
 0xd97   :  { %v2964_v49 = vpack.c.bf16 %v2155_v62, %v2154_v30 }
 0xd98   :  { %2752 = vmatprep.mubr.msk.f32.mxu0 %vm374_vm4, %v1883_v54  ;;  %v2967_v54 = vpack.c.bf16 %v2157_v50, %v2156_v6 }
 0xd99   :  { %v3088_v14 = vpop.eup %3087 }
 0xd9a   :  { %v1884_v29 = vmul.f32 %v3088_v14, %v3084_v47  ;;  %v3090_v1 = vpop.eup %3089 }
 0xd9c   :  { %2753 = vmatmul.mubr.msk.f32.vlgmr.msra.gmra.mrb[8].mxu0 %vm374_vm4, %v1884_v29 }
 0xd9d   :  { %2759 = vmatprep.mubr.msk.f32.mxu0 %vm3121_vm6, %v3122_v53 }
 0xdb4   :  { %v2083_v55 = vpop.trf.xlu1 }
 0xdb5   :  { %2101 = vperm.xlu0 %3014, %v2083_v55  }
 0xdb8   :  { %v2084_v43 = vpop.trf.xlu1 }
 0xdb9   :  { %3016 = vset.pattern.permute.xlu0 %v3119_v56  ;;  %2106 = vperm.xlu1 %3015, %v2084_v43   ;;  %v2149_v56 = vld [vmem:[%s3695_s3 + $0x188] sm:$0xff] }
 0xdba   :  { %2122 = vperm.xlu0 %3016, %v2083_v55  }
 0xdbe   :  { %2126 = vperm.xlu0 %3016, %v2084_v43   ;;  %v2148_v43 = vld [vmem:[%s3695_s3 + $0x180] sm:$0xff] }
 0xdbf   :  { %v2979_v58 = vpack.c.bf16 %v2149_v56, %v2148_v43 }
 0xdc1   :  { %2980 = vmatpush3.bf16.msra.mxu1 %v2979_v58 }
 0xe34   :  { %v2102_v5 = vpop.permute.xlu0 %2101 }
 0xe38   :  { %v2107_v28 = vpop.permute.xlu1 %2106 }
 0xe39   :  { %v2123_v8 = vpop.permute.xlu0 %2122 }
 0xe3d   :  { %v2127_v27 = vpop.permute.xlu0 %2126 }
 0xe6f   :  { %v2754_v10 = vpop.f32.mrb[8].mxu0 }
 0xe70   :  { %v1975_v13 = vmul.f32 %v2754_v10, %v2464_v7  ;;  %v1959_v20 = vpop.f32.mrb[9].mxu0  ;;  %v2162_v10 = vld [vmem:[%s3695_s3 + $0x1f0] sm:$0xff] }
 0xe71   :  { %v1974_v22 = vmul.f32 %v2464_v7, %v1959_v20  ;;  %v2165_v20 = vld [vmem:[%s3695_s3 + $0x208] sm:$0xff] }
 0xe72   :  { %v1981_v23 = vadd.f32 %v2465_v11, %v1975_v13 }
 0xe73   :  { %v1980_v24 = vadd.f32 %v2465_v11, %v1974_v22  ;;  %v2163_v11 = vld [vmem:[%s3695_s3 + $0x1f8] sm:$0xff]  ;;  %v2991_v22 = vpack.c.bf16 %v2165_v20, %v2164_v4 }
 0xe74   :  { %v1983_v16 = vmax.f32 %v1981_v23, 0.0  ;;  %v2988_v13 = vpack.c.bf16 %v2163_v11, %v2162_v10  ;;  %v2470_v23 = vld [vmem:[%s3695_s3 + $0x14e] ss:$0 sm:$0xff] }
 0xe75   :  { %v1982_v17 = vmax.f32 %v1980_v24, 0.0 }
 0xe76   :  { %v2130_v18 = vmul.f32 %v2127_v27, %v1983_v16  ;;  %v2110_v19 = vmul.f32 %v2107_v28, %v1983_v16 }
 0xe77   :  { %v2954_v12 = vpack.c.bf16 %v1983_v16, %v1982_v17  ;;  %v2129_v34 = vmul.f32 %v2123_v8, %v1982_v17  ;;  %v2109_v41 = vmul.f32 %v2102_v5, %v1982_v17 }
 0xe78   :  { %v2132_v31 = vsel %vm2112_vm7, %v2130_v18, -inf  ;;  %v2113_v38 = vsel %vm2112_vm7, %v2110_v19, -inf }
 0xe79   :  { %v2131_v37 = vsel %vm131_vm12, %v2129_v34, -inf  ;;  %v2111_v39 = vsel %vm131_vm12, %v2109_v41, -inf  ;;  %2956 = vmatpush3.bf16.msk.msra.mxu0 %vm3536_vm15, %v2954_v12 }
 0xe7a   :  { %v2133_v35 = vmax.f32 %v2131_v37, %v2132_v31  ;;  %v2114_v36 = vmax.f32 %v2111_v39, %v2113_v38  ;;  %2957 = vmatprep.subr.bf16.mxu0 %v3120_v57 }
 0xe7c   :  { %v2134_v42 = vrot.slane %v2133_v35, 4  ;;  %v2115_v44 = vrot.slane %v2114_v36, 4  ;;  %2760 = vmatmul.mubr.msk.f32.vlgmr.msra.gmra.mrb[10].mxu0 %vm374_vm4, %v3557_v9  ;;  %vm2140_vm4 = vcmask 1040384  }
 0xe7d   :  { %2959 = vmatpush3.bf16.msra.mxu0 %v2958_v33  ;;  %2778 = vmatprep.mubr.msk.f32.mxu0 %vm3121_vm6, %v3122_v53 }
 0xe7e   :  { %v2135_v45 = vmax.f32 %v2133_v35, %v2134_v42  ;;  %v2116_v25 = vmax.f32 %v2114_v36, %v2115_v44  ;;  %2960 = vmatprep.subr.bf16.mxu0 %v3120_v57 }
 0xe80   :  { %v2136_v46 = vrot.slane %v2135_v45, 2  ;;  %v2117_v47 = vrot.slane %v2116_v25, 2 }
 0xe81   :  { %2962 = vmatpush3.bf16.msra.mxu0 %v2961_v26 }
 0xe82   :  { %v2137_v9 = vmax.f32 %v2135_v45, %v2136_v46  ;;  %v2118_v32 = vmax.f32 %v2116_v25, %v2117_v47  ;;  %2963 = vmatprep.subr.bf16.mxu0 %v3120_v57 }
 0xe84   :  { %v2138_v51 = vrot.slane %v2137_v9, 1  ;;  %v2119_v48 = vrot.slane %v2118_v32, 1 }
 0xe85   :  { %2965 = vmatpush3.bf16.msra.mxu0 %v2964_v49 }
 0xe86   :  { %v2139_v14 = vmax.f32 %v2137_v9, %v2138_v51  ;;  %v2120_v29 = vmax.f32 %v2118_v32, %v2119_v48  ;;  %2966 = vmatprep.subr.bf16.mxu0 %v3120_v57 }
 0xe88   :  { %v2141_v55 = vsel %vm2140_vm4, %v2120_v29, %v2139_v14 }
 0xe89   :  { %2968 = vmatpush3.bf16.msra.mxu0 %v2967_v54 }
 0xe8a   :  { %2981 = vmatprep.subr.bf16.mxu0 %v3120_v57 }
 0xe8c   :  { %2779 = vmatmul.mubr.msk.f32.vlgmr.msra.gmra.mrb[12].mxu0 %vm131_vm12, %v2141_v55 }
 0xe8d   :  { %2816 = vmatprep.mubr.msk.f32.mxu0 %vm3121_vm6, %v3122_v53  ;;  %v2160_v53 = vld [vmem:[%s3695_s3 + $0x1e0] sm:$0xff]  ;;  %2983 = vmatpush3.bf16.msra.mxu0 %v2982_v61 }
 0xe8e   :  { %v2985_v0 = vpack.c.bf16 %v2161_v63, %v2160_v53  ;;  %2984 = vmatprep.subr.bf16.mxu0 %v3120_v57 }
 0xe91   :  { %2986 = vmatpush3.bf16.msra.mxu0 %v2985_v0 }
 0xe92   :  { %2987 = vmatprep.subr.bf16.mxu0 %v3120_v57 }
 0xe95   :  { %2989 = vmatpush3.bf16.msra.mxu0 %v2988_v13 }
 0xe96   :  { %2990 = vmatprep.subr.bf16.mxu0 %v3120_v57  ;;  %v2471_v57 = vld [vmem:[%s3695_s3 + $0x14f] ss:$0 sm:$0xff] }
 0xe99   :  { %2992 = vmatpush3.bf16.msra.mxu0 %v2991_v22 }
 0xf4f   :  { %v2061_v2 = vpop.f32.mrb[10].mxu0 }
 0xf50   :  { %v2066_v3 = vmul.f32 %v3090_v1, %v2061_v2  ;;  %v2761_v5 = vpop.f32.mrb[11].mxu0 }
 0xf52   :  { %2798 = vmatmul.mubr.msk.f32.vlgmr.msra.gmra.mrb[10].mxu1 %vm131_vm12, %v2066_v3 }
 0xf5f   :  { %v2237_v7 = vpop.f32.mrb[12].mxu0 }
 0xf60   :  { %v2780_v8 = vpop.f32.mrb[13].mxu0 }
0x1025   :  { %v2310_v24 = vpop.f32.mrb[10].mxu1 }
0x1026   :  { %v2311_v27 = vadd.f32 %v2310_v24, %v2237_v7  ;;  %v2799_v28 = vpop.f32.mrb[11].mxu1 }
0x1028   :  { %v2318_v16 = vadd.f32 %v2470_v23, %v2311_v27 }
0x102a   :  { %v2319_v17 = vmax.f32 %v2318_v16, 0.0 }
0x102c   :  { %2817 = vmatmul.mubr.msk.f32.vlgmr.msra.gmra.mrb[14].mxu0 %vm131_vm12, %v2319_v17 }
0x10ff   :  { %v2393_v18 = vpop.f32.mrb[14].mxu0 }
0x1100   :  { %v2394_v19 = vadd.f32 %v2471_v57, %v2393_v18  ;;  %v2818_v15 = vpop.f32.mrb[15].mxu0 }
0x1102   :  { %2398 = vst.msk [vmem:[#allocation2] sm:$0x3] %vm2397_vm9, %v2394_v19 }
0x1103   :  { %3102 = shalt.err (!%p3099_p4)
}
0x1104   :  { %s3103_s6 = scalar_lea.hbm %s3696_s4, 32 }
0x1105   :  { %p3104_p5 = scmp.ne.s32.totalorder %s3696_s4, %s3103_s6  ;;  %p3107_p6 = scmp.lt.u32.totalorder %s3103_s6, %s3696_s4 }
0x1107   :  { %p3109_p7 = pnand %p3107_p6, %p3104_p5 }
0x1109   :  { %3112 = shalt.err (!%p3109_p7)
}
0x110a   :  { %2408 = dma.vmem_to_hbm [thread:$0]  %s2406_s29, 32, %s3696_s4, [#allocation3]  }
0x110b   :  { %3113 = dma.done.wait [#allocation3], 32  }
0x110c   :  { %3114 = vsyncadd [#allocation3], 4294967264 }
0x110d   :  { %2412 = vsyncpa [#allocation3], 1 }

</bundles_post_ra>
